<compile_context>
chip_gen: v5e
topology: v5e:2x2
jax: 0.10.0
libtpu: 0.0.40
codegen_flags: <defaults>
</compile_context>

<pallas_src>
import functools

import jax
import jax.numpy as jnp
from jax.experimental import pallas as pl
from jax.experimental.pallas import tpu as pltpu

_LN_EPS = 1e-5


# ------------------------------ Pallas kernel -------------------------------


def _fused_encoder_kernel(
    x_ref,                               # (1, S, D)  f32 tokens (cls + pos already added)
    wqkv_ref, bqkv_ref,                  # (1, D, 3D) bf16 / (1, 1, 3D) f32
    wo_ref, bo_ref,                      # (1, D, D)  bf16 / (1, 1, D)  f32
    w1_ref, b1_ref,                      # (1, D, F)  bf16 / (1, 1, F)  f32
    w2_ref, b2_ref,                      # (1, F, D)  bf16 / (1, 1, D)  f32
    g1_ref, be1_ref, g2_ref, be2_ref,    # (1, 1, D)  f32 per-layer LayerNorm params
    gf_ref, bf_ref,                      # (1, D)     f32 final encoder LayerNorm params
    o_ref,                               # (1, 1, D)  f32 cls-token output
    h_scr,                               # VMEM (S, D) f32, resident across the layer axis
    *, nhead, eps,
):
    layer = pl.program_id(1)
    n_layers = pl.num_programs(1)

    # Fresh tokens at layer 0; otherwise continue from the resident activations.
    @pl.when(layer == 0)
    def _():
        h_scr[...] = x_ref[0].astype(jnp.float32)

    x = h_scr[...]                        # (S, D) f32
    S, D = x.shape
    hd = D // nhead
    xb = x.astype(jnp.bfloat16)

    # ---- fused QKV projection: one wide bf16 MXU matmul ----
    qkv = jnp.dot(xb, wqkv_ref[0], preferred_element_type=jnp.float32) + bqkv_ref[0]
    qkv_b = qkv.astype(jnp.bfloat16)      # (S, 3D); 1/sqrt(hd) already folded into Wq

    # ---- multi-head attention: heads batched (leading axis), bf16 in / f32 acc ----
    qh = jnp.stack([qkv_b[:, h * hd:(h + 1) * hd] for h in range(nhead)], axis=0)
    kh = jnp.stack([qkv_b[:, D + h * hd:D + (h + 1) * hd] for h in range(nhead)], axis=0)
    vh = jnp.stack([qkv_b[:, 2 * D + h * hd:2 * D + (h + 1) * hd] for h in range(nhead)], axis=0)
    s = jnp.einsum('hqd,hkd->hqk', qh, kh,
                   preferred_element_type=jnp.float32)            # (H, S, S) f32
    s = s - jnp.max(s, axis=-1, keepdims=True)
    p = jnp.exp(s)
    p = p * pl.reciprocal(jnp.sum(p, axis=-1, keepdims=True), approx=True)
    ctx = jnp.einsum('hqk,hkd->hqd', p.astype(jnp.bfloat16), vh,
                     preferred_element_type=jnp.float32)          # (H, S, hd)
    ctx2d = jnp.concatenate([ctx[h] for h in range(nhead)], axis=-1)   # (S, D)

    # ---- output projection: one wide bf16 matmul (no per-head accumulate chain) ----
    attn = jnp.dot(ctx2d.astype(jnp.bfloat16), wo_ref[0],
                   preferred_element_type=jnp.float32) + bo_ref[0]

    # ---- residual + LayerNorm 1 (post-norm) ----
    h1 = x + attn
    mean = jnp.mean(h1, axis=-1, keepdims=True)
    var = jnp.mean(jnp.square(h1 - mean), axis=-1, keepdims=True)
    h1 = (h1 - mean) * jax.lax.rsqrt(var + eps) * g1_ref[0] + be1_ref[0]

    # ---- feed-forward (ReLU), bf16 matmuls with f32 accumulation ----
    ff = jnp.dot(h1.astype(jnp.bfloat16), w1_ref[0],
                 preferred_element_type=jnp.float32) + b1_ref[0]
    ff = jnp.maximum(ff, 0.0)
    ff = jnp.dot(ff.astype(jnp.bfloat16), w2_ref[0],
                 preferred_element_type=jnp.float32) + b2_ref[0]

    # ---- residual + LayerNorm 2 ----
    h2 = h1 + ff
    mean = jnp.mean(h2, axis=-1, keepdims=True)
    var = jnp.mean(jnp.square(h2 - mean), axis=-1, keepdims=True)
    h2 = (h2 - mean) * jax.lax.rsqrt(var + eps) * g2_ref[0] + be2_ref[0]

    h_scr[...] = h2                       # stays in VMEM for the next layer

    # ---- final encoder LayerNorm on the cls token only; single HBM store ----
    @pl.when(layer == n_layers - 1)
    def _():
        cls = h2[0:1, :]                  # (1, D)
        m = jnp.mean(cls, axis=-1, keepdims=True)
        v = jnp.mean(jnp.square(cls - m), axis=-1, keepdims=True)
        y = (cls - m) * jax.lax.rsqrt(v + eps) * gf_ref[...] + bf_ref[...]
        o_ref[0] = y.astype(o_ref.dtype)


# ------------------------------ kernel wrapper -------------------------------


def fused_encoder(h, params, *, nhead, eps=_LN_EPS):
    """All encoder layers + final cls LayerNorm in one pallas_call."""
    B, S, D = h.shape
    L = params["wqkv"].shape[0]
    F = params["w1"].shape[2]

    def layer_spec(full_shape):
        # Stream one layer's weight slice per inner grid step (leading layer axis).
        tail = full_shape[1:]
        nz = len(tail)
        return pl.BlockSpec((1,) + tail, lambda b, l, _nz=nz: (l,) + (0,) * _nz)

    def const_spec(full_shape):
        zeros = (0,) * len(full_shape)
        return pl.BlockSpec(full_shape, lambda b, l, _z=zeros: _z)

    return pl.pallas_call(
        functools.partial(_fused_encoder_kernel, nhead=nhead, eps=eps),
        out_shape=jax.ShapeDtypeStruct((B, 1, D), h.dtype),
        grid=(B, L),
        in_specs=[
            pl.BlockSpec((1, S, D), lambda b, l: (b, 0, 0)),   # tokens (read at layer 0)
            layer_spec((L, D, 3 * D)), layer_spec((L, 1, 3 * D)),
            layer_spec((L, D, D)), layer_spec((L, 1, D)),
            layer_spec((L, D, F)), layer_spec((L, 1, F)),
            layer_spec((L, F, D)), layer_spec((L, 1, D)),
            layer_spec((L, 1, D)), layer_spec((L, 1, D)),
            layer_spec((L, 1, D)), layer_spec((L, 1, D)),
            const_spec((1, D)), const_spec((1, D)),
        ],
        out_specs=pl.BlockSpec((1, 1, D), lambda b, l: (b, 0, 0)),
        scratch_shapes=[pltpu.VMEM((S, D), jnp.float32)],
        compiler_params=pltpu.CompilerParams(
            dimension_semantics=("parallel", "arbitrary"),
            vmem_limit_bytes=32 * 1024 * 1024,
        ),
    )(h,
      params["wqkv"], params["bqkv"],
      params["wo"], params["bo"],
      params["w1"], params["b1"],
      params["w2"], params["b2"],
      params["g1"], params["be1"],
      params["g2"], params["be2"],
      params["final_norm_g"], params["final_norm_b"])


# ----------------------------- parameter setup ------------------------------


def trunc_normal(key, shape, std=0.02):
    # approximation of torch trunc_normal_ (normal_().fmod_(2).mul_(std))
    return jnp.clip(jax.random.normal(key, shape, jnp.float32), -2.0, 2.0) * std


def init_params(key, embed_dim, n_layers, clip_length, dim_ff, nhead):
    D, F, L = embed_dim, dim_ff, n_layers
    hd = D // nhead
    scale = 1.0 / float(hd) ** 0.5
    keys = jax.random.split(key, 2 + 4 * n_layers)

    wqkv, wo, w1, w2 = [], [], [], []
    for i in range(n_layers):
        k0, k1, k2, k3 = keys[2 + 4 * i: 2 + 4 * (i + 1)]
        # math-layout weights (x @ W); equals torch in_proj_weight.T / weight.T
        qkv_w = trunc_normal(k0, (D, 3 * D))
        # fold the 1/sqrt(head_dim) softmax scale into the Q projection (free at runtime)
        qkv_w = qkv_w.at[:, :D].multiply(scale)
        wqkv.append(qkv_w)
        wo.append(trunc_normal(k1, (D, D)))
        w1.append(trunc_normal(k2, (D, F)))
        w2.append(trunc_normal(k3, (F, D)))

    return {
        "cls_token": trunc_normal(keys[0], (1, 1, D)),
        "pos_embed": trunc_normal(keys[1], (1, clip_length + 1, D)),
        # per-layer weights stacked with a leading layer axis (streamed per grid step)
        "wqkv": jnp.stack(wqkv).astype(jnp.bfloat16),      # (L, D, 3D)
        "bqkv": jnp.zeros((L, 1, 3 * D), jnp.float32),
        "wo": jnp.stack(wo).astype(jnp.bfloat16),          # (L, D, D)
        "bo": jnp.zeros((L, 1, D), jnp.float32),
        "w1": jnp.stack(w1).astype(jnp.bfloat16),          # (L, D, F)
        "b1": jnp.zeros((L, 1, F), jnp.float32),
        "w2": jnp.stack(w2).astype(jnp.bfloat16),          # (L, F, D)
        "b2": jnp.zeros((L, 1, D), jnp.float32),
        "g1": jnp.ones((L, 1, D), jnp.float32),
        "be1": jnp.zeros((L, 1, D), jnp.float32),
        "g2": jnp.ones((L, 1, D), jnp.float32),
        "be2": jnp.zeros((L, 1, D), jnp.float32),
        "final_norm_g": jnp.ones((1, D), jnp.float32),
        "final_norm_b": jnp.zeros((1, D), jnp.float32),
    }


# ------------------------------- forward pass -------------------------------


@functools.partial(jax.jit, static_argnames=("nhead",))
def taggregate_forward(x, params, *, nhead):
    B, _, D = x.shape
    cls = jnp.broadcast_to(params["cls_token"], (B, 1, D))
    h = jnp.concatenate([cls, x], axis=1) + params["pos_embed"]   # (B, S, D)
    # All layers + final LayerNorm fused; only the cls token (== o[0]) is produced.
    out = fused_encoder(h, params, nhead=nhead)                   # (B, 1, D)
    return out[:, 0, :]                                           # (B, D)


# ---------------------------------- main ------------------------------------

if __name__ == "__main__":
    B, clip_length, embed_dim = 2, 8, 32
    n_layers, nhead, dim_ff = 2, 8, 64

    key = jax.random.PRNGKey(0)
    kx, kp = jax.random.split(key)
    x = jax.random.normal(kx, (B, clip_length, embed_dim), jnp.float32)
    params = init_params(kp, embed_dim, n_layers, clip_length, dim_ff, nhead)

    out = taggregate_forward(x, params, nhead=nhead)
    out = jax.block_until_ready(out)
    assert out.shape == (B, embed_dim)
    assert bool(jnp.all(jnp.isfinite(out)))
    print("KERNEL_OK")
</pallas_src>

<mosaic_0001>
module attributes {stable_mosaic.version = 11 : i64} {
  func.func @_fused_encoder_kernel(%arg0: i32, %arg1: i32, %arg2: memref<1x9x32xf32, #tpu.memory_space<vmem>>, %arg3: memref<1x32x96xbf16, #tpu.memory_space<vmem>>, %arg4: memref<1x1x96xf32, #tpu.memory_space<vmem>>, %arg5: memref<1x32x32xbf16, #tpu.memory_space<vmem>>, %arg6: memref<1x1x32xf32, #tpu.memory_space<vmem>>, %arg7: memref<1x32x64xbf16, #tpu.memory_space<vmem>>, %arg8: memref<1x1x64xf32, #tpu.memory_space<vmem>>, %arg9: memref<1x64x32xbf16, #tpu.memory_space<vmem>>, %arg10: memref<1x1x32xf32, #tpu.memory_space<vmem>>, %arg11: memref<1x1x32xf32, #tpu.memory_space<vmem>>, %arg12: memref<1x1x32xf32, #tpu.memory_space<vmem>>, %arg13: memref<1x1x32xf32, #tpu.memory_space<vmem>>, %arg14: memref<1x1x32xf32, #tpu.memory_space<vmem>>, %arg15: memref<1x32xf32, #tpu.memory_space<vmem>>, %arg16: memref<1x32xf32, #tpu.memory_space<vmem>>, %arg17: memref<1x1x32xf32, #tpu.memory_space<vmem>>, %arg18: memref<9x32xf32, #tpu.memory_space<vmem>>) attributes {dimension_semantics = [#tpu.dimension_semantics<parallel>, #tpu.dimension_semantics<arbitrary>], iteration_bounds = array<i64: 2, 2>, scalar_prefetch = 0 : i64, scratch_operands = 1 : i64, tpu.core_type = #tpu.core_type<tc>, window_params = [{transform_indices = @transform_0, window_bounds = array<i64: 1, 9, 32>}, {transform_indices = @transform_1, window_bounds = array<i64: 1, 32, 96>}, {transform_indices = @transform_2, window_bounds = array<i64: 1, 1, 96>}, {transform_indices = @transform_3, window_bounds = array<i64: 1, 32, 32>}, {transform_indices = @transform_4, window_bounds = array<i64: 1, 1, 32>}, {transform_indices = @transform_5, window_bounds = array<i64: 1, 32, 64>}, {transform_indices = @transform_6, window_bounds = array<i64: 1, 1, 64>}, {transform_indices = @transform_7, window_bounds = array<i64: 1, 64, 32>}, {transform_indices = @transform_8, window_bounds = array<i64: 1, 1, 32>}, {transform_indices = @transform_9, window_bounds = array<i64: 1, 1, 32>}, {transform_indices = @transform_10, window_bounds = array<i64: 1, 1, 32>}, {transform_indices = @transform_11, window_bounds = array<i64: 1, 1, 32>}, {transform_indices = @transform_12, window_bounds = array<i64: 1, 1, 32>}, {pipeline_mode = #tpu.pipeline_mode<synchronous>, transform_indices = @transform_13, window_bounds = array<i64: 1, 32>}, {pipeline_mode = #tpu.pipeline_mode<synchronous>, transform_indices = @transform_14, window_bounds = array<i64: 1, 32>}, {transform_indices = @transform_15, window_bounds = array<i64: 1, 1, 32>}]} {
    %c0_i32 = arith.constant 0 : i32
    %0 = arith.cmpi eq, %arg1, %c0_i32 : i32
    %1 = arith.extui %0 : i1 to i32
    %c0_i32_0 = arith.constant 0 : i32
    %2 = arith.cmpi ne, %1, %c0_i32_0 : i32
    scf.if %2 {
      %c0_59 = arith.constant 0 : index
      %c0_60 = arith.constant 0 : index
      %c0_61 = arith.constant 0 : index
      %178 = vector.load %arg2[%c0_59, %c0_60, %c0_61] : memref<1x9x32xf32, #tpu.memory_space<vmem>>, vector<1x9x32xf32>
      %179 = vector.shape_cast %178 : vector<1x9x32xf32> to vector<9x32xf32>
      %c0_62 = arith.constant 0 : index
      %c0_63 = arith.constant 0 : index
      %180 = vector.load %arg18[%c0_62, %c0_63] : memref<9x32xf32, #tpu.memory_space<vmem>>, vector<9x32xf32>
      tpu.vector_store %arg18[%c0_62, %c0_63], %179 {strides = array<i32>} : memref<9x32xf32, #tpu.memory_space<vmem>>, vector<9x32xf32>,
    } else {
    }
    %c0 = arith.constant 0 : index
    %c0_1 = arith.constant 0 : index
    %3 = vector.load %arg18[%c0, %c0_1] : memref<9x32xf32, #tpu.memory_space<vmem>>, vector<9x32xf32>
    %4 = arith.truncf %3 : vector<9x32xf32> to vector<9x32xbf16>
    %c0_2 = arith.constant 0 : index
    %c0_3 = arith.constant 0 : index
    %c0_4 = arith.constant 0 : index
    %5 = vector.load %arg3[%c0_2, %c0_3, %c0_4] : memref<1x32x96xbf16, #tpu.memory_space<vmem>>, vector<1x32x96xbf16>
    %6 = vector.shape_cast %5 : vector<1x32x96xbf16> to vector<32x96xbf16>
    %cst = arith.constant dense<0.000000e+00> : vector<9x96xf32>
    %7 = tpu.matmul %4, %6, %cst {dimension_numbers = #tpu.dot_dimension_numbers<[1], [0], [0], [1], [0, 0, 1, 1], [], []>} : vector<9x32xbf16>, vector<32x96xbf16>, vector<9x96xf32> -> vector<9x96xf32>
    %c0_5 = arith.constant 0 : index
    %c0_6 = arith.constant 0 : index
    %c0_7 = arith.constant 0 : index
    %8 = vector.load %arg4[%c0_5, %c0_6, %c0_7] : memref<1x1x96xf32, #tpu.memory_space<vmem>>, vector<1x1x96xf32>
    %9 = vector.shape_cast %8 : vector<1x1x96xf32> to vector<1x96xf32>
    %10 = vector.broadcast %9 : vector<1x96xf32> to vector<9x96xf32>
    %11 = arith.addf %7, %10 : vector<9x96xf32>
    %12 = arith.truncf %11 : vector<9x96xf32> to vector<9x96xbf16>
    %13 = vector.extract_strided_slice %12 {offsets = [0, 0], sizes = [9, 4], strides = [1, 1]} : vector<9x96xbf16> to vector<9x4xbf16>
    %14 = vector.extract_strided_slice %12 {offsets = [0, 4], sizes = [9, 4], strides = [1, 1]} : vector<9x96xbf16> to vector<9x4xbf16>
    %15 = vector.extract_strided_slice %12 {offsets = [0, 8], sizes = [9, 4], strides = [1, 1]} : vector<9x96xbf16> to vector<9x4xbf16>
    %16 = vector.extract_strided_slice %12 {offsets = [0, 12], sizes = [9, 4], strides = [1, 1]} : vector<9x96xbf16> to vector<9x4xbf16>
    %17 = vector.extract_strided_slice %12 {offsets = [0, 16], sizes = [9, 4], strides = [1, 1]} : vector<9x96xbf16> to vector<9x4xbf16>
    %18 = vector.extract_strided_slice %12 {offsets = [0, 20], sizes = [9, 4], strides = [1, 1]} : vector<9x96xbf16> to vector<9x4xbf16>
    %19 = vector.extract_strided_slice %12 {offsets = [0, 24], sizes = [9, 4], strides = [1, 1]} : vector<9x96xbf16> to vector<9x4xbf16>
    %20 = vector.extract_strided_slice %12 {offsets = [0, 28], sizes = [9, 4], strides = [1, 1]} : vector<9x96xbf16> to vector<9x4xbf16>
    %21 = vector.shape_cast %13 : vector<9x4xbf16> to vector<1x9x4xbf16>
    %22 = vector.shape_cast %14 : vector<9x4xbf16> to vector<1x9x4xbf16>
    %23 = vector.shape_cast %15 : vector<9x4xbf16> to vector<1x9x4xbf16>
    %24 = vector.shape_cast %16 : vector<9x4xbf16> to vector<1x9x4xbf16>
    %25 = vector.shape_cast %17 : vector<9x4xbf16> to vector<1x9x4xbf16>
    %26 = vector.shape_cast %18 : vector<9x4xbf16> to vector<1x9x4xbf16>
    %27 = vector.shape_cast %19 : vector<9x4xbf16> to vector<1x9x4xbf16>
    %28 = vector.shape_cast %20 : vector<9x4xbf16> to vector<1x9x4xbf16>
    %29 = tpu.concatenate %21, %22, %23, %24, %25, %26, %27, %28 in 0 : vector<1x9x4xbf16>, vector<1x9x4xbf16>, vector<1x9x4xbf16>, vector<1x9x4xbf16>, vector<1x9x4xbf16>, vector<1x9x4xbf16>, vector<1x9x4xbf16>, vector<1x9x4xbf16> -> vector<8x9x4xbf16>
    %30 = vector.extract_strided_slice %12 {offsets = [0, 32], sizes = [9, 4], strides = [1, 1]} : vector<9x96xbf16> to vector<9x4xbf16>
    %31 = vector.extract_strided_slice %12 {offsets = [0, 36], sizes = [9, 4], strides = [1, 1]} : vector<9x96xbf16> to vector<9x4xbf16>
    %32 = vector.extract_strided_slice %12 {offsets = [0, 40], sizes = [9, 4], strides = [1, 1]} : vector<9x96xbf16> to vector<9x4xbf16>
    %33 = vector.extract_strided_slice %12 {offsets = [0, 44], sizes = [9, 4], strides = [1, 1]} : vector<9x96xbf16> to vector<9x4xbf16>
    %34 = vector.extract_strided_slice %12 {offsets = [0, 48], sizes = [9, 4], strides = [1, 1]} : vector<9x96xbf16> to vector<9x4xbf16>
    %35 = vector.extract_strided_slice %12 {offsets = [0, 52], sizes = [9, 4], strides = [1, 1]} : vector<9x96xbf16> to vector<9x4xbf16>
    %36 = vector.extract_strided_slice %12 {offsets = [0, 56], sizes = [9, 4], strides = [1, 1]} : vector<9x96xbf16> to vector<9x4xbf16>
    %37 = vector.extract_strided_slice %12 {offsets = [0, 60], sizes = [9, 4], strides = [1, 1]} : vector<9x96xbf16> to vector<9x4xbf16>
    %38 = vector.shape_cast %30 : vector<9x4xbf16> to vector<1x9x4xbf16>
    %39 = vector.shape_cast %31 : vector<9x4xbf16> to vector<1x9x4xbf16>
    %40 = vector.shape_cast %32 : vector<9x4xbf16> to vector<1x9x4xbf16>
    %41 = vector.shape_cast %33 : vector<9x4xbf16> to vector<1x9x4xbf16>
    %42 = vector.shape_cast %34 : vector<9x4xbf16> to vector<1x9x4xbf16>
    %43 = vector.shape_cast %35 : vector<9x4xbf16> to vector<1x9x4xbf16>
    %44 = vector.shape_cast %36 : vector<9x4xbf16> to vector<1x9x4xbf16>
    %45 = vector.shape_cast %37 : vector<9x4xbf16> to vector<1x9x4xbf16>
    %46 = tpu.concatenate %38, %39, %40, %41, %42, %43, %44, %45 in 0 : vector<1x9x4xbf16>, vector<1x9x4xbf16>, vector<1x9x4xbf16>, vector<1x9x4xbf16>, vector<1x9x4xbf16>, vector<1x9x4xbf16>, vector<1x9x4xbf16>, vector<1x9x4xbf16> -> vector<8x9x4xbf16>
    %47 = vector.extract_strided_slice %12 {offsets = [0, 64], sizes = [9, 4], strides = [1, 1]} : vector<9x96xbf16> to vector<9x4xbf16>
    %48 = vector.extract_strided_slice %12 {offsets = [0, 68], sizes = [9, 4], strides = [1, 1]} : vector<9x96xbf16> to vector<9x4xbf16>
    %49 = vector.extract_strided_slice %12 {offsets = [0, 72], sizes = [9, 4], strides = [1, 1]} : vector<9x96xbf16> to vector<9x4xbf16>
    %50 = vector.extract_strided_slice %12 {offsets = [0, 76], sizes = [9, 4], strides = [1, 1]} : vector<9x96xbf16> to vector<9x4xbf16>
    %51 = vector.extract_strided_slice %12 {offsets = [0, 80], sizes = [9, 4], strides = [1, 1]} : vector<9x96xbf16> to vector<9x4xbf16>
    %52 = vector.extract_strided_slice %12 {offsets = [0, 84], sizes = [9, 4], strides = [1, 1]} : vector<9x96xbf16> to vector<9x4xbf16>
    %53 = vector.extract_strided_slice %12 {offsets = [0, 88], sizes = [9, 4], strides = [1, 1]} : vector<9x96xbf16> to vector<9x4xbf16>
    %54 = vector.extract_strided_slice %12 {offsets = [0, 92], sizes = [9, 4], strides = [1, 1]} : vector<9x96xbf16> to vector<9x4xbf16>
    %55 = vector.shape_cast %47 : vector<9x4xbf16> to vector<1x9x4xbf16>
    %56 = vector.shape_cast %48 : vector<9x4xbf16> to vector<1x9x4xbf16>
    %57 = vector.shape_cast %49 : vector<9x4xbf16> to vector<1x9x4xbf16>
    %58 = vector.shape_cast %50 : vector<9x4xbf16> to vector<1x9x4xbf16>
    %59 = vector.shape_cast %51 : vector<9x4xbf16> to vector<1x9x4xbf16>
    %60 = vector.shape_cast %52 : vector<9x4xbf16> to vector<1x9x4xbf16>
    %61 = vector.shape_cast %53 : vector<9x4xbf16> to vector<1x9x4xbf16>
    %62 = vector.shape_cast %54 : vector<9x4xbf16> to vector<1x9x4xbf16>
    %63 = tpu.concatenate %55, %56, %57, %58, %59, %60, %61, %62 in 0 : vector<1x9x4xbf16>, vector<1x9x4xbf16>, vector<1x9x4xbf16>, vector<1x9x4xbf16>, vector<1x9x4xbf16>, vector<1x9x4xbf16>, vector<1x9x4xbf16>, vector<1x9x4xbf16> -> vector<8x9x4xbf16>
    "tpu.trace_start"() <{level = 10 : i32, message = "hqd,hkd->hqk"}> : () -> ()
    %cst_8 = arith.constant dense<0.000000e+00> : vector<8x9x9xf32>
    %64 = tpu.matmul %29, %46, %cst_8 {dimension_numbers = #tpu.dot_dimension_numbers<[2], [2], [1], [1], [0, 0, 0, 1, 1, 1], [0], [0]>} : vector<8x9x4xbf16>, vector<8x9x4xbf16>, vector<8x9x9xf32> -> vector<8x9x9xf32>
    "tpu.trace_stop"() : () -> ()
    %cst_9 = arith.constant dense<0xFF800000> : vector<8x9xf32>
    %65 = vector.multi_reduction <maximumf>, %64, %cst_9 [2] : vector<8x9x9xf32> to vector<8x9xf32>
    %66 = vector.shape_cast %65 : vector<8x9xf32> to vector<8x9x1xf32>
    %67 = vector.broadcast %66 : vector<8x9x1xf32> to vector<8x9x9xf32>
    %68 = arith.subf %64, %67 : vector<8x9x9xf32>
    %69 = math.exp %68 : vector<8x9x9xf32>
    %cst_10 = arith.constant dense<0.000000e+00> : vector<8x9xf32>
    %70 = vector.multi_reduction <add>, %69, %cst_10 [2] : vector<8x9x9xf32> to vector<8x9xf32>
    %71 = vector.shape_cast %70 : vector<8x9xf32> to vector<8x9x1xf32>
    %72 = tpu.reciprocal %71 {approx = true} : vector<8x9x1xf32> -> vector<8x9x1xf32>
    %73 = vector.broadcast %72 : vector<8x9x1xf32> to vector<8x9x9xf32>
    %74 = arith.mulf %69, %73 : vector<8x9x9xf32>
    %75 = arith.truncf %74 : vector<8x9x9xf32> to vector<8x9x9xbf16>
    "tpu.trace_start"() <{level = 10 : i32, message = "hqk,hkd->hqd"}> : () -> ()
    %cst_11 = arith.constant dense<0.000000e+00> : vector<8x9x4xf32>
    %76 = tpu.matmul %75, %63, %cst_11 {dimension_numbers = #tpu.dot_dimension_numbers<[2], [1], [1], [2], [0, 0, 0, 1, 1, 2], [0], [0]>} : vector<8x9x9xbf16>, vector<8x9x4xbf16>, vector<8x9x4xf32> -> vector<8x9x4xf32>
    "tpu.trace_stop"() : () -> ()
    %77 = vector.extract_strided_slice %76 {offsets = [0, 0, 0], sizes = [1, 9, 4], strides = [1, 1, 1]} : vector<8x9x4xf32> to vector<1x9x4xf32>
    %78 = vector.shape_cast %77 : vector<1x9x4xf32> to vector<9x4xf32>
    %79 = vector.extract_strided_slice %76 {offsets = [1, 0, 0], sizes = [1, 9, 4], strides = [1, 1, 1]} : vector<8x9x4xf32> to vector<1x9x4xf32>
    %80 = vector.shape_cast %79 : vector<1x9x4xf32> to vector<9x4xf32>
    %81 = vector.extract_strided_slice %76 {offsets = [2, 0, 0], sizes = [1, 9, 4], strides = [1, 1, 1]} : vector<8x9x4xf32> to vector<1x9x4xf32>
    %82 = vector.shape_cast %81 : vector<1x9x4xf32> to vector<9x4xf32>
    %83 = vector.extract_strided_slice %76 {offsets = [3, 0, 0], sizes = [1, 9, 4], strides = [1, 1, 1]} : vector<8x9x4xf32> to vector<1x9x4xf32>
    %84 = vector.shape_cast %83 : vector<1x9x4xf32> to vector<9x4xf32>
    %85 = vector.extract_strided_slice %76 {offsets = [4, 0, 0], sizes = [1, 9, 4], strides = [1, 1, 1]} : vector<8x9x4xf32> to vector<1x9x4xf32>
    %86 = vector.shape_cast %85 : vector<1x9x4xf32> to vector<9x4xf32>
    %87 = vector.extract_strided_slice %76 {offsets = [5, 0, 0], sizes = [1, 9, 4], strides = [1, 1, 1]} : vector<8x9x4xf32> to vector<1x9x4xf32>
    %88 = vector.shape_cast %87 : vector<1x9x4xf32> to vector<9x4xf32>
    %89 = vector.extract_strided_slice %76 {offsets = [6, 0, 0], sizes = [1, 9, 4], strides = [1, 1, 1]} : vector<8x9x4xf32> to vector<1x9x4xf32>
    %90 = vector.shape_cast %89 : vector<1x9x4xf32> to vector<9x4xf32>
    %91 = vector.extract_strided_slice %76 {offsets = [7, 0, 0], sizes = [1, 9, 4], strides = [1, 1, 1]} : vector<8x9x4xf32> to vector<1x9x4xf32>
    %92 = vector.shape_cast %91 : vector<1x9x4xf32> to vector<9x4xf32>
    %93 = tpu.concatenate %78, %80, %82, %84, %86, %88, %90, %92 in 1 : vector<9x4xf32>, vector<9x4xf32>, vector<9x4xf32>, vector<9x4xf32>, vector<9x4xf32>, vector<9x4xf32>, vector<9x4xf32>, vector<9x4xf32> -> vector<9x32xf32>
    %94 = arith.truncf %93 : vector<9x32xf32> to vector<9x32xbf16>
    %c0_12 = arith.constant 0 : index
    %c0_13 = arith.constant 0 : index
    %c0_14 = arith.constant 0 : index
    %95 = vector.load %arg5[%c0_12, %c0_13, %c0_14] : memref<1x32x32xbf16, #tpu.memory_space<vmem>>, vector<1x32x32xbf16>
    %96 = vector.shape_cast %95 : vector<1x32x32xbf16> to vector<32x32xbf16>
    %cst_15 = arith.constant dense<0.000000e+00> : vector<9x32xf32>
    %97 = tpu.matmul %94, %96, %cst_15 {dimension_numbers = #tpu.dot_dimension_numbers<[1], [0], [0], [1], [0, 0, 1, 1], [], []>} : vector<9x32xbf16>, vector<32x32xbf16>, vector<9x32xf32> -> vector<9x32xf32>
    %c0_16 = arith.constant 0 : index
    %c0_17 = arith.constant 0 : index
    %c0_18 = arith.constant 0 : index
    %98 = vector.load %arg6[%c0_16, %c0_17, %c0_18] : memref<1x1x32xf32, #tpu.memory_space<vmem>>, vector<1x1x32xf32>
    %99 = vector.shape_cast %98 : vector<1x1x32xf32> to vector<1x32xf32>
    %100 = vector.broadcast %99 : vector<1x32xf32> to vector<9x32xf32>
    %101 = arith.addf %97, %100 : vector<9x32xf32>
    %102 = arith.addf %3, %101 : vector<9x32xf32>
    %cst_19 = arith.constant dense<0.000000e+00> : vector<9xf32>
    %103 = vector.multi_reduction <add>, %102, %cst_19 [1] : vector<9x32xf32> to vector<9xf32>
    %104 = vector.shape_cast %103 : vector<9xf32> to vector<9x1xf32>
    %cst_20 = arith.constant 3.200000e+01 : f32
    %105 = vector.broadcast %cst_20 : f32 to vector<9x1xf32>
    %106 = arith.divf %104, %105 : vector<9x1xf32>
    %107 = vector.broadcast %106 : vector<9x1xf32> to vector<9x32xf32>
    %108 = arith.subf %102, %107 : vector<9x32xf32>
    %109 = arith.mulf %108, %108 : vector<9x32xf32>
    %cst_21 = arith.constant dense<0.000000e+00> : vector<9xf32>
    %110 = vector.multi_reduction <add>, %109, %cst_21 [1] : vector<9x32xf32> to vector<9xf32>
    %111 = vector.shape_cast %110 : vector<9xf32> to vector<9x1xf32>
    %cst_22 = arith.constant 3.200000e+01 : f32
    %112 = vector.broadcast %cst_22 : f32 to vector<9x1xf32>
    %113 = arith.divf %111, %112 : vector<9x1xf32>
    %114 = vector.broadcast %106 : vector<9x1xf32> to vector<9x32xf32>
    %115 = arith.subf %102, %114 : vector<9x32xf32>
    %cst_23 = arith.constant 9.99999974E-6 : f32
    %116 = vector.broadcast %cst_23 : f32 to vector<9x1xf32>
    %117 = arith.addf %113, %116 : vector<9x1xf32>
    %118 = math.rsqrt %117 : vector<9x1xf32>
    %119 = vector.broadcast %118 : vector<9x1xf32> to vector<9x32xf32>
    %120 = arith.mulf %115, %119 : vector<9x32xf32>
    %c0_24 = arith.constant 0 : index
    %c0_25 = arith.constant 0 : index
    %c0_26 = arith.constant 0 : index
    %121 = vector.load %arg11[%c0_24, %c0_25, %c0_26] : memref<1x1x32xf32, #tpu.memory_space<vmem>>, vector<1x1x32xf32>
    %122 = vector.shape_cast %121 : vector<1x1x32xf32> to vector<1x32xf32>
    %123 = vector.broadcast %122 : vector<1x32xf32> to vector<9x32xf32>
    %124 = arith.mulf %120, %123 : vector<9x32xf32>
    %c0_27 = arith.constant 0 : index
    %c0_28 = arith.constant 0 : index
    %c0_29 = arith.constant 0 : index
    %125 = vector.load %arg12[%c0_27, %c0_28, %c0_29] : memref<1x1x32xf32, #tpu.memory_space<vmem>>, vector<1x1x32xf32>
    %126 = vector.shape_cast %125 : vector<1x1x32xf32> to vector<1x32xf32>
    %127 = vector.broadcast %126 : vector<1x32xf32> to vector<9x32xf32>
    %128 = arith.addf %124, %127 : vector<9x32xf32>
    %129 = arith.truncf %128 : vector<9x32xf32> to vector<9x32xbf16>
    %c0_30 = arith.constant 0 : index
    %c0_31 = arith.constant 0 : index
    %c0_32 = arith.constant 0 : index
    %130 = vector.load %arg7[%c0_30, %c0_31, %c0_32] : memref<1x32x64xbf16, #tpu.memory_space<vmem>>, vector<1x32x64xbf16>
    %131 = vector.shape_cast %130 : vector<1x32x64xbf16> to vector<32x64xbf16>
    %cst_33 = arith.constant dense<0.000000e+00> : vector<9x64xf32>
    %132 = tpu.matmul %129, %131, %cst_33 {dimension_numbers = #tpu.dot_dimension_numbers<[1], [0], [0], [1], [0, 0, 1, 1], [], []>} : vector<9x32xbf16>, vector<32x64xbf16>, vector<9x64xf32> -> vector<9x64xf32>
    %c0_34 = arith.constant 0 : index
    %c0_35 = arith.constant 0 : index
    %c0_36 = arith.constant 0 : index
    %133 = vector.load %arg8[%c0_34, %c0_35, %c0_36] : memref<1x1x64xf32, #tpu.memory_space<vmem>>, vector<1x1x64xf32>
    %134 = vector.shape_cast %133 : vector<1x1x64xf32> to vector<1x64xf32>
    %135 = vector.broadcast %134 : vector<1x64xf32> to vector<9x64xf32>
    %136 = arith.addf %132, %135 : vector<9x64xf32>
    %cst_37 = arith.constant 0.000000e+00 : f32
    %137 = vector.broadcast %cst_37 : f32 to vector<9x64xf32>
    %138 = arith.maximumf %136, %137 : vector<9x64xf32>
    %139 = arith.truncf %138 : vector<9x64xf32> to vector<9x64xbf16>
    %c0_38 = arith.constant 0 : index
    %c0_39 = arith.constant 0 : index
    %c0_40 = arith.constant 0 : index
    %140 = vector.load %arg9[%c0_38, %c0_39, %c0_40] : memref<1x64x32xbf16, #tpu.memory_space<vmem>>, vector<1x64x32xbf16>
    %141 = vector.shape_cast %140 : vector<1x64x32xbf16> to vector<64x32xbf16>
    %cst_41 = arith.constant dense<0.000000e+00> : vector<9x32xf32>
    %142 = tpu.matmul %139, %141, %cst_41 {dimension_numbers = #tpu.dot_dimension_numbers<[1], [0], [0], [1], [0, 0, 1, 1], [], []>} : vector<9x64xbf16>, vector<64x32xbf16>, vector<9x32xf32> -> vector<9x32xf32>
    %c0_42 = arith.constant 0 : index
    %c0_43 = arith.constant 0 : index
    %c0_44 = arith.constant 0 : index
    %143 = vector.load %arg10[%c0_42, %c0_43, %c0_44] : memref<1x1x32xf32, #tpu.memory_space<vmem>>, vector<1x1x32xf32>
    %144 = vector.shape_cast %143 : vector<1x1x32xf32> to vector<1x32xf32>
    %145 = vector.broadcast %144 : vector<1x32xf32> to vector<9x32xf32>
    %146 = arith.addf %142, %145 : vector<9x32xf32>
    %147 = arith.addf %128, %146 : vector<9x32xf32>
    %cst_45 = arith.constant dense<0.000000e+00> : vector<9xf32>
    %148 = vector.multi_reduction <add>, %147, %cst_45 [1] : vector<9x32xf32> to vector<9xf32>
    %149 = vector.shape_cast %148 : vector<9xf32> to vector<9x1xf32>
    %cst_46 = arith.constant 3.200000e+01 : f32
    %150 = vector.broadcast %cst_46 : f32 to vector<9x1xf32>
    %151 = arith.divf %149, %150 : vector<9x1xf32>
    %152 = vector.broadcast %151 : vector<9x1xf32> to vector<9x32xf32>
    %153 = arith.subf %147, %152 : vector<9x32xf32>
    %154 = arith.mulf %153, %153 : vector<9x32xf32>
    %cst_47 = arith.constant dense<0.000000e+00> : vector<9xf32>
    %155 = vector.multi_reduction <add>, %154, %cst_47 [1] : vector<9x32xf32> to vector<9xf32>
    %156 = vector.shape_cast %155 : vector<9xf32> to vector<9x1xf32>
    %cst_48 = arith.constant 3.200000e+01 : f32
    %157 = vector.broadcast %cst_48 : f32 to vector<9x1xf32>
    %158 = arith.divf %156, %157 : vector<9x1xf32>
    %159 = vector.broadcast %151 : vector<9x1xf32> to vector<9x32xf32>
    %160 = arith.subf %147, %159 : vector<9x32xf32>
    %cst_49 = arith.constant 9.99999974E-6 : f32
    %161 = vector.broadcast %cst_49 : f32 to vector<9x1xf32>
    %162 = arith.addf %158, %161 : vector<9x1xf32>
    %163 = math.rsqrt %162 : vector<9x1xf32>
    %164 = vector.broadcast %163 : vector<9x1xf32> to vector<9x32xf32>
    %165 = arith.mulf %160, %164 : vector<9x32xf32>
    %c0_50 = arith.constant 0 : index
    %c0_51 = arith.constant 0 : index
    %c0_52 = arith.constant 0 : index
    %166 = vector.load %arg13[%c0_50, %c0_51, %c0_52] : memref<1x1x32xf32, #tpu.memory_space<vmem>>, vector<1x1x32xf32>
    %167 = vector.shape_cast %166 : vector<1x1x32xf32> to vector<1x32xf32>
    %168 = vector.broadcast %167 : vector<1x32xf32> to vector<9x32xf32>
    %169 = arith.mulf %165, %168 : vector<9x32xf32>
    %c0_53 = arith.constant 0 : index
    %c0_54 = arith.constant 0 : index
    %c0_55 = arith.constant 0 : index
    %170 = vector.load %arg14[%c0_53, %c0_54, %c0_55] : memref<1x1x32xf32, #tpu.memory_space<vmem>>, vector<1x1x32xf32>
    %171 = vector.shape_cast %170 : vector<1x1x32xf32> to vector<1x32xf32>
    %172 = vector.broadcast %171 : vector<1x32xf32> to vector<9x32xf32>
    %173 = arith.addf %169, %172 : vector<9x32xf32>
    %c0_56 = arith.constant 0 : index
    %c0_57 = arith.constant 0 : index
    %174 = vector.load %arg18[%c0_56, %c0_57] : memref<9x32xf32, #tpu.memory_space<vmem>>, vector<9x32xf32>
    tpu.vector_store %arg18[%c0_56, %c0_57], %173 {strides = array<i32>} : memref<9x32xf32, #tpu.memory_space<vmem>>, vector<9x32xf32>,
    %c1_i32 = arith.constant 1 : i32
    %175 = arith.cmpi eq, %arg1, %c1_i32 : i32
    %176 = arith.extui %175 : i1 to i32
    %c0_i32_58 = arith.constant 0 : i32
    %177 = arith.cmpi ne, %176, %c0_i32_58 : i32
    scf.if %177 {
      %178 = vector.extract_strided_slice %173 {offsets = [0, 0], sizes = [1, 32], strides = [1, 1]} : vector<9x32xf32> to vector<1x32xf32>
      %cst_59 = arith.constant dense<0.000000e+00> : vector<1xf32>
      %179 = vector.multi_reduction <add>, %178, %cst_59 [1] : vector<1x32xf32> to vector<1xf32>
      %180 = vector.shape_cast %179 : vector<1xf32> to vector<1x1xf32>
      %cst_60 = arith.constant 3.200000e+01 : f32
      %181 = vector.broadcast %cst_60 : f32 to vector<1x1xf32>
      %182 = arith.divf %180, %181 : vector<1x1xf32>
      %183 = vector.broadcast %182 : vector<1x1xf32> to vector<1x32xf32>
      %184 = arith.subf %178, %183 : vector<1x32xf32>
      %185 = arith.mulf %184, %184 : vector<1x32xf32>
      %cst_61 = arith.constant dense<0.000000e+00> : vector<1xf32>
      %186 = vector.multi_reduction <add>, %185, %cst_61 [1] : vector<1x32xf32> to vector<1xf32>
      %187 = vector.shape_cast %186 : vector<1xf32> to vector<1x1xf32>
      %cst_62 = arith.constant 3.200000e+01 : f32
      %188 = vector.broadcast %cst_62 : f32 to vector<1x1xf32>
      %189 = arith.divf %187, %188 : vector<1x1xf32>
      %190 = vector.broadcast %182 : vector<1x1xf32> to vector<1x32xf32>
      %191 = arith.subf %178, %190 : vector<1x32xf32>
      %cst_63 = arith.constant 9.99999974E-6 : f32
      %192 = vector.broadcast %cst_63 : f32 to vector<1x1xf32>
      %193 = arith.addf %189, %192 : vector<1x1xf32>
      %194 = math.rsqrt %193 : vector<1x1xf32>
      %195 = vector.broadcast %194 : vector<1x1xf32> to vector<1x32xf32>
      %196 = arith.mulf %191, %195 : vector<1x32xf32>
      %c0_64 = arith.constant 0 : index
      %c0_65 = arith.constant 0 : index
      %197 = vector.load %arg15[%c0_64, %c0_65] : memref<1x32xf32, #tpu.memory_space<vmem>>, vector<1x32xf32>
      %198 = arith.mulf %196, %197 : vector<1x32xf32>
      %c0_66 = arith.constant 0 : index
      %c0_67 = arith.constant 0 : index
      %199 = vector.load %arg16[%c0_66, %c0_67] : memref<1x32xf32, #tpu.memory_space<vmem>>, vector<1x32xf32>
      %200 = arith.addf %198, %199 : vector<1x32xf32>
      %c0_68 = arith.constant 0 : index
      %c0_69 = arith.constant 0 : index
      %c0_70 = arith.constant 0 : index
      %201 = vector.load %arg17[%c0_68, %c0_69, %c0_70] : memref<1x1x32xf32, #tpu.memory_space<vmem>>, vector<1x1x32xf32>
      %202 = vector.shape_cast %201 : vector<1x1x32xf32> to vector<1x32xf32>
      %203 = vector.shape_cast %200 : vector<1x32xf32> to vector<1x1x32xf32>
      tpu.vector_store %arg17[%c0_68, %c0_69, %c0_70], %203 {strides = array<i32>} : memref<1x1x32xf32, #tpu.memory_space<vmem>>, vector<1x1x32xf32>,
    } else {
    }
    return
  }
  func.func @transform_0(%arg0: i32, %arg1: i32) -> (i32, i32, i32) {
    %c0_i32 = arith.constant 0 : i32
    %c0_i32_0 = arith.constant 0 : i32
    %c0_i32_1 = arith.constant 0 : i32
    return %arg0, %c0_i32, %c0_i32_0 : i32, i32, i32
  }
  func.func @transform_1(%arg0: i32, %arg1: i32) -> (i32, i32, i32) {
    %c0_i32 = arith.constant 0 : i32
    %c0_i32_0 = arith.constant 0 : i32
    %c0_i32_1 = arith.constant 0 : i32
    return %arg1, %c0_i32, %c0_i32_0 : i32, i32, i32
  }
  func.func @transform_2(%arg0: i32, %arg1: i32) -> (i32, i32, i32) {
    %c0_i32 = arith.constant 0 : i32
    %c0_i32_0 = arith.constant 0 : i32
    %c0_i32_1 = arith.constant 0 : i32
    return %arg1, %c0_i32, %c0_i32_0 : i32, i32, i32
  }
  func.func @transform_3(%arg0: i32, %arg1: i32) -> (i32, i32, i32) {
    %c0_i32 = arith.constant 0 : i32
    %c0_i32_0 = arith.constant 0 : i32
    %c0_i32_1 = arith.constant 0 : i32
    return %arg1, %c0_i32, %c0_i32_0 : i32, i32, i32
  }
  func.func @transform_4(%arg0: i32, %arg1: i32) -> (i32, i32, i32) {
    %c0_i32 = arith.constant 0 : i32
    %c0_i32_0 = arith.constant 0 : i32
    %c0_i32_1 = arith.constant 0 : i32
    return %arg1, %c0_i32, %c0_i32_0 : i32, i32, i32
  }
  func.func @transform_5(%arg0: i32, %arg1: i32) -> (i32, i32, i32) {
    %c0_i32 = arith.constant 0 : i32
    %c0_i32_0 = arith.constant 0 : i32
    %c0_i32_1 = arith.constant 0 : i32
    return %arg1, %c0_i32, %c0_i32_0 : i32, i32, i32
  }
  func.func @transform_6(%arg0: i32, %arg1: i32) -> (i32, i32, i32) {
    %c0_i32 = arith.constant 0 : i32
    %c0_i32_0 = arith.constant 0 : i32
    %c0_i32_1 = arith.constant 0 : i32
    return %arg1, %c0_i32, %c0_i32_0 : i32, i32, i32
  }
  func.func @transform_7(%arg0: i32, %arg1: i32) -> (i32, i32, i32) {
    %c0_i32 = arith.constant 0 : i32
    %c0_i32_0 = arith.constant 0 : i32
    %c0_i32_1 = arith.constant 0 : i32
    return %arg1, %c0_i32, %c0_i32_0 : i32, i32, i32
  }
  func.func @transform_8(%arg0: i32, %arg1: i32) -> (i32, i32, i32) {
    %c0_i32 = arith.constant 0 : i32
    %c0_i32_0 = arith.constant 0 : i32
    %c0_i32_1 = arith.constant 0 : i32
    return %arg1, %c0_i32, %c0_i32_0 : i32, i32, i32
  }
  func.func @transform_9(%arg0: i32, %arg1: i32) -> (i32, i32, i32) {
    %c0_i32 = arith.constant 0 : i32
    %c0_i32_0 = arith.constant 0 : i32
    %c0_i32_1 = arith.constant 0 : i32
    return %arg1, %c0_i32, %c0_i32_0 : i32, i32, i32
  }
  func.func @transform_10(%arg0: i32, %arg1: i32) -> (i32, i32, i32) {
    %c0_i32 = arith.constant 0 : i32
    %c0_i32_0 = arith.constant 0 : i32
    %c0_i32_1 = arith.constant 0 : i32
    return %arg1, %c0_i32, %c0_i32_0 : i32, i32, i32
  }
  func.func @transform_11(%arg0: i32, %arg1: i32) -> (i32, i32, i32) {
    %c0_i32 = arith.constant 0 : i32
    %c0_i32_0 = arith.constant 0 : i32
    %c0_i32_1 = arith.constant 0 : i32
    return %arg1, %c0_i32, %c0_i32_0 : i32, i32, i32
  }
  func.func @transform_12(%arg0: i32, %arg1: i32) -> (i32, i32, i32) {
    %c0_i32 = arith.constant 0 : i32
    %c0_i32_0 = arith.constant 0 : i32
    %c0_i32_1 = arith.constant 0 : i32
    return %arg1, %c0_i32, %c0_i32_0 : i32, i32, i32
  }
  func.func @transform_13(%arg0: i32, %arg1: i32) -> (i32, i32) {
    %c0_i32 = arith.constant 0 : i32
    %c0_i32_0 = arith.constant 0 : i32
    %c0_i32_1 = arith.constant 0 : i32
    return %c0_i32, %c0_i32_0 : i32, i32
  }
  func.func @transform_14(%arg0: i32, %arg1: i32) -> (i32, i32) {
    %c0_i32 = arith.constant 0 : i32
    %c0_i32_0 = arith.constant 0 : i32
    %c0_i32_1 = arith.constant 0 : i32
    return %c0_i32, %c0_i32_0 : i32, i32
  }
  func.func @transform_15(%arg0: i32, %arg1: i32) -> (i32, i32, i32) {
    %c0_i32 = arith.constant 0 : i32
    %c0_i32_0 = arith.constant 0 : i32
    %c0_i32_1 = arith.constant 0 : i32
    return %arg0, %c0_i32, %c0_i32_0 : i32, i32, i32
  }
}

</mosaic_0001>

<bundles_post_ra>
// kernel: taggregate_forward.1
= control target key start
LH: loop header
LB: loop body
LE: loop exit
PB: predicated region body
PF: predicated region fallthrough
CT: control target
= control target key end

     0   :  { %s2943_s0 = inlined_call_operand.vmem [shape: f32[2,9,32], index: 0, kind: input, shape index: {}]   ;;  %s2944_s1 = inlined_call_operand.vmem [shape: bf16[2,32,96], index: 1, kind: input, shape index: {}]   ;;  %s2945_s2 = inlined_call_operand.vmem [shape: f32[2,1,96], index: 2, kind: input, shape index: {}]   ;;  %s2946_s3 = inlined_call_operand.vmem [shape: bf16[2,32,32], index: 3, kind: input, shape index: {}]   ;;  %s2947_s4 = inlined_call_operand.vmem [shape: f32[2,1,32], index: 4, kind: input, shape index: {}]   ;;  %s2948_s5 = inlined_call_operand.vmem [shape: bf16[2,32,64], index: 5, kind: input, shape index: {}]   ;;  %s2949_s6 = inlined_call_operand.vmem [shape: f32[2,1,64], index: 6, kind: input, shape index: {}]   ;;  %s2950_s7 = inlined_call_operand.vmem [shape: bf16[2,64,32], index: 7, kind: input, shape index: {}]   ;;  %s2951_s8 = inlined_call_operand.vmem [shape: f32[2,1,32], index: 8, kind: input, shape index: {}]   ;;  %s2952_s9 = inlined_call_operand.vmem [shape: f32[2,1,32], index: 9, kind: input, shape index: {}]   ;;  %s2953_s10 = inlined_call_operand.vmem [shape: f32[2,1,32], index: 10, kind: input, shape index: {}]   ;;  %s2954_s11 = inlined_call_operand.vmem [shape: f32[2,1,32], index: 11, kind: input, shape index: {}]   ;;  %s2955_s12 = inlined_call_operand.vmem [shape: f32[2,1,32], index: 12, kind: input, shape index: {}]   ;;  %s2956_s13 = inlined_call_operand.vmem [shape: f32[1,32], index: 13, kind: input, shape index: {}]   ;;  %s2957_s14 = inlined_call_operand.vmem [shape: f32[1,32], index: 14, kind: input, shape index: {}]   ;;  %s2958_s15 = inlined_call_operand.hbm [shape: f32[2,1,32], index: 15, kind: output, shape index: {}]  }
   0x1   :  { %2973 = sst [smem:[#allocation19_spill]] %s2943_s0 }
   0x2   :  { %2974 = sst [smem:[#allocation20_spill]] %s2944_s1 }
   0x3   :  { %2975 = sst [smem:[#allocation21_spill]] %s2946_s3 }
   0x4   :  { %2976 = sst [smem:[#allocation22_spill]] %s2948_s5 }
   0x5   :  { %2977 = sst [smem:[#allocation23_spill]] %s2956_s13 }
   0x6   :  { %2978 = sst [smem:[#allocation24_spill]] %s2957_s14 }
   0x7   :  { %2979 = sst [smem:[#allocation25_spill]] %s2958_s15 }
   0x8   :  { %20 = vsyncpa [#allocation4], 0 }
   0x9   :  { %22 = vsyncpa [#allocation4 + $0x1], 0  ;;  %s2458_s18 = smov 0   ;;  %s2460_s19 = smov 0  }
   0xa   :  { %s2462_s20 = smov 0   ;;  %s2464_s21 = smov 0  }
   0xb   :  { %s2466_s22 = smov 0   ;;  %s2468_s23 = smov 0  }
   0xc   :  { %s2470_s24 = smov 0   ;;  %s2472_s25 = smov 0  }
   0xd LB: > { %2980 = sst [smem:[#allocation6_spill]] %s2330_s18  ;;  %s1960_s26 = sadd.s32 4294967295, %s2358_s25   ;;  %s2358_s25 = sphi %s2472_s25, %s28_s25   ;;  %s2354_s24 = sphi %s2470_s24, %s3021_s24   ;;  %s2350_s23 = sphi %s2468_s23, %s3020_s23   ;;  %s2346_s22 = sphi %s2466_s22, %s3019_s22   ;;  %s2342_s21 = sphi %s2464_s21, %s3018_s21   ;;  %s2338_s20 = sphi %s2462_s20, %s3017_s20   ;;  %s2334_s19 = sphi %s2460_s19, %s3023_s19   ;;  %s2330_s18 = sphi %s2458_s18, %s3022_s18  }
   0xe   : > { %2981 = sst [smem:[#allocation7_spill]] %s2338_s20  ;;  %s1961_s27 = sadd.s32 4294967294, %s2358_s25  }
   0xf   : > { %2982 = sst [smem:[#allocation8_spill]] %s2342_s21  ;;  %s37_s28 = sadd.s32 1, %s2350_s23 }
  0x10   : > { %2983 = sst [smem:[#allocation9_spill]] %s2346_s22  ;;  %p38_p0 = scmp.ge.s32.totalorder %s37_s28, 2 }
  0x11   : > { %2984 = sst [smem:[#allocation10_spill]] %s2350_s23  ;;  %s40_s29 = sadd.s32 1, %s2354_s24 }
  0x12   : > { %2985 = sst [smem:[#allocation11_spill]] %s2354_s24  ;;  %p437_p1 = scmp.ne.s32.totalorder %s2338_s20, %s2334_s19 }
  0x13   : > { %2986 = sst [smem:[#allocation12_spill]] %s2358_s25  ;;  %p438_p2 = scmp.eq.s32.totalorder %s1960_s26, 3 }
  0x14   : > { %s3025_s28 = smov (%p38_p0, %s37_s28), 0  ;;  %s3027_s29 = smov (!%p38_p0, %s40_s29), %s2354_s24 }
  0x15   : > { %2987 = sst [smem:[#allocation13_spill]] %s3025_s28  ;;  %p2507_p3 = por %p438_p2, %p437_p1 }
  0x16   : > { %p443_p4 = scmp.ne.s32.totalorder %s2334_s19, %s2330_s18  ;;  %p42_p5 = scmp.ge.s32.totalorder %s3027_s29, 2 }
  0x17   : > { %s2988_s30 = scalar_select %p2507_p3, 1, 0 }
  0x18   : > { %p444_p6 = scmp.eq.s32.totalorder %s1961_s27, 3  ;;  %p1964_p7 = scmp.ge.s32.totalorder %s2358_s25, 1 }
  0x19   : > { %2989 = sst [smem:[#allocation14_spill]] %s2988_s30  ;;  %p556_p8 = scmp.lt.s32.totalorder %s2358_s25, 5 }
  0x1a   : > { %s3029_s29 = smov (%p42_p5, %s3027_s29), 0  ;;  %p2517_p9 = por %p444_p6, %p443_p4 }
  0x1b   : > { %2990 = sst [smem:[#allocation15_spill]] %s3029_s29  ;;  %p557_p10 = pnand %p1964_p7, %p556_p8 }
  0x1c   : > { %s2991_s16 = scalar_select %p2517_p9, 1, 0 }
  0x1d   : > { %s424_s17 = ssub.s32 %s2354_s24, %s3029_s29  ;;  %s427_s26 = sadd.s32 1, %s2338_s20 }
  0x1e   : > { %2992 = sst [smem:[#allocation16_spill]] %s2991_s16  ;;  %p425_p11 = scmp.eq.s32.totalorder %s424_s17, 0 }
  0x1f   : > { %560 = sbr.rel (%p557_p10) target bundleno = 2488 (0x9b8), region = 80 }
  0x20   : > { %s2525_s28 = scalar_select %p425_p11, %s2338_s20, %s427_s26  }
  0x22   : > { %2993 = sst [smem:[#allocation17_spill]] %s2525_s28 }
  0x24   : > { %p647_p12 = scmp.lt.s32.totalorder %s2346_s22, 1  ;;  %p652_p13 = scmp.lt.s32.totalorder %s2342_s21, 1 }
  0x25   : > { %s2994_s0 = sld [smem:[#allocation19_spill]]  ;;  %s2999_s14 = sand.u32 1, %s2334_s19  }
  0x26   : > { %s648_s23 = scalar_select %p647_p12, %s2346_s22, 1 }
  0x27   : > { %s2532_s18 = scalar_select %p652_p13, %s2342_s21, 1 }
  0x28   : > { %s2039_s17 = sshll.u32 %s648_s23, 4  ;;  %s2995_s1 = sld [smem:[#allocation20_spill]] }
  0x29   : > { %s2040_s24 = sshll.u32 %s2532_s18, 4  ;;  %s2996_s3 = sld [smem:[#allocation21_spill]] }
  0x2a   : > { %s2998_s5 = sld [smem:[#allocation22_spill]]  ;;  %s2043_s25 = sshll.u32 %s2532_s18, 5 }
  0x2b   : > { %s651_s27 = scalar_lea.vmem %s2994_s0, %s2039_s17  ;;  %s686_s26 = scalar_lea.vmem %s2952_s9, %s2532_s18 }
  0x2c   : > { %s689_s29 = scalar_lea.vmem %s2953_s10, %s2532_s18  ;;  %s695_s30 = scalar_lea.vmem %s2955_s12, %s2532_s18 }
  0x2e   : > { %s656_s16 = scalar_lea.vmem %s2995_s1, %s2040_s24  ;;  %s692_s1 = scalar_lea.vmem %s2954_s11, %s2532_s18 }
  0x2f   : > { %s2548_s13 = scalar_lea.vmem %s2996_s3, %s2040_s24  ;;  %s2591_s3 = scalar_lea.vmem [#allocation3], %s2999_s14 }
  0x30   : > { %2997 = sst [smem:[#allocation18_spill]] %s2548_s13  ;;  %s2557_s0 = scalar_lea.vmem %s2998_s5, %s2040_s24 }
  0x31   : > { %s2571_s13 = scalar_lea.vmem %s2950_s7, %s2043_s25  ;;  %s3000_s25 = sld [smem:[#allocation8_spill]] }
  0x37   : > { %p1975_p0 = scmp.ne.s32.totalorder %s3000_s25, 0 }
  0x39   : > { %700 = sbr.rel (%p1975_p0) target bundleno = 65 (0x41), region = 84 }
  0x3e   : > { %v701_v0 = vld [vmem:[%s651_s27] sm:$0xff]  ;;  %vm703_vm0 = vcmask 261120   ;;  %v702_v1 = vld [vmem:[%s651_s27 + $0x8] sm:$0x1]  ;;  %vm705_vm1 = vcmask 253952  }
  0x3f   : > { %704 = vst.msk [vmem:[#allocation2] sm:$0xff] %vm703_vm0, %v701_v0 }
  0x40   : > { %706 = vst.msk [vmem:[#allocation2 + $0x8] sm:$0x1] %vm705_vm1, %v702_v1 }
  0x41 PF: > { %v2045_v2 = vld [vmem:[%s656_s16 + $0x8] sm:$0xff]  ;;  %v2044_v3 = vld [vmem:[%s656_s16] sm:$0xff]  ;;  %vm730_vm2 = vcmask 261120   ;;  %s3001_s22 = scalar_lea.vmem %s2945_s2, %s2532_s18  ;;  %s2360_s27 = smov 116   ;;  %vm785_vm3 = vcmask 31744   ;;  %vm1185_vm4 = vcmask 1043456  }
  0x42   : > { %740 = vmatpush.bf16.msra.mxu0 %v2045_v2  ;;  %v2178_v7 = vld [vmem:[%s3001_s22] ss:$0 sm:$0xff]  ;;  %s2361_s21 = smov 120   ;;  %s2362_s16 = smov 124   ;;  %vm1186_vm5 = vcmask 1044480   ;;  %v2369_v2 = vmov 65535  }
  0x43   : > { %s2363_s23 = smov 104   ;;  %s2364_s24 = smov 108   ;;  %vm981_vm6 = vcmask 72704   ;;  %vm985_vm7 = vcmask 65536   ;;  %vm1453_vm8 = vcmask 64512   ;;  %vm1456_vm9 = vcmask 97280  }
  0x44   : > { %s2365_s17 = smov 112   ;;  %s2366_s20 = smov 100   ;;  %vm1459_vm10 = vcmask 130048   ;;  %vm1462_vm11 = vcmask 162816   ;;  %vm1465_vm12 = vcmask 195584   ;;  %vm1468_vm13 = vcmask 228352  }
  0x45   : > { %s2367_s28 = smov 96   ;;  %s2368_s15 = smov 64   ;;  %vm1514_vm14 = vcmask 253952  }
  0x46   : > { %v707_v4 = vld [vmem:[#allocation2] sm:$0xff]  ;;  %741 = vmatpush.bf16.msra.mxu0 %v2044_v3  ;;  %v1187_v3 = vsel %vm1185_vm4, 4294967295, %v2369_v2  ;;  %s2370_s25 = smov 16   ;;  %s2371_s5 = smov 12  }
  0x47   : > { %v708_v5 = vld [vmem:[#allocation2 + $0x8] sm:$0x1]  ;;  %s2372_s14 = smov 4   ;;  %s2373_s22 = smov 8  }
  0x48   : > { %v709_v6 = vpack.c.bf16 %v708_v5, %v707_v4  ;;  %v2642_v4 = vsel %vm1186_vm5, %v1187_v3, 0 }
  0x4a   : > { %1984 = vmatmul.msk.bf16.vlgmr.msra.gmra.mxu0 %vm730_vm2, %v709_v6 }
  0xc7   : > { %v743_v8 = vpop.f32.mrf.mxu0 }
  0xc8   : > { %v744_v9 = vadd.f32 %v2178_v7, %v743_v8 }
  0xca   : > { %v748_v10 = vpack.c.bf16 %v744_v9, %v744_v9 }
  0xcc   : > { %760 = vrot.lane.b32.xlu2 %v748_v10, %s2360_s27  ;;  %756 = vrot.lane.b32.xlu1 %v748_v10, %s2361_s21  ;;  %v780_v15 = vunpack.c.l.b16 %v748_v10 }
  0xcd   : > { %752 = vrot.lane.b32.xlu0 %v748_v10, %s2362_s16 }
  0xcf   : > { %v745_v11 = vpop.f32.mrf.mxu0 }
  0xd0   : > { %v746_v12 = vadd.f32 %v2178_v7, %v745_v11 }
  0xd2   : > { %v749_v13 = vpack.c.bf16 %v746_v12, %v746_v12 }
  0xd4   : > { %762 = vrot.lane.b32.xlu2 %v749_v13, %s2360_s27  ;;  %758 = vrot.lane.b32.xlu1 %v749_v13, %s2361_s21  ;;  %v781_v14 = vunpack.c.l.b16 %v749_v13  ;;  %s3002_s27 = sld [smem:[#allocation18_spill]]  ;;  %s2374_s21 = smov 28  }
  0xd5   : > { %754 = vrot.lane.b32.xlu0 %v749_v13, %s2362_s16  ;;  %s2375_s16 = smov 20  }
  0xd6   : > { %v782_v16 = vpack.c.b16 %v781_v14, %v780_v15 }
  0xdc   : > { %772 = vrot.lane.b32.xlu2 %v748_v10, %s2363_s23  ;;  %770 = vrot.lane.b32.xlu1 %v749_v13, %s2364_s24 }
  0xdd   : > { %768 = vrot.lane.b32.xlu0 %v748_v10, %s2364_s24 }
  0xe4   : > { %766 = vrot.lane.b32.xlu2 %v749_v13, %s2365_s17  ;;  %764 = vrot.lane.b32.xlu1 %v748_v10, %s2365_s17 }
  0xe5   : > { %774 = vrot.lane.b32.xlu0 %v749_v13, %s2363_s23  ;;  %s2376_s23 = smov 24  }
  0xec   : > { %778 = vrot.lane.b32.xlu1 %v749_v13, %s2366_s20 }
  0xed   : > { %776 = vrot.lane.b32.xlu0 %v748_v10, %s2366_s20  ;;  %s3003_s20 = scalar_lea.vmem %s2947_s4, %s2532_s18 }
  0xf4   : > { %783 = vrot.lane.b32.xlu1 %v782_v16, %s2367_s28 }
 0x126   : > { %v761_v17 = vpop.permute.xlu2 %760 }
 0x127   : > { %v856_v34 = vunpack.c.l.b16 %v761_v17 }
 0x12e   : > { %v763_v20 = vpop.permute.xlu2 %762 }
 0x12f   : > { %v857_v30 = vunpack.c.l.b16 %v763_v20 }
 0x131   : > { %v2603_v36 = vpack.c.b16 %v857_v30, %v856_v34 }
 0x136   : > { %v773_v28 = vpop.permute.xlu2 %772 }
 0x137   : > { %v931_v43 = vunpack.c.l.b16 %v773_v28 }
 0x13e   : > { %v757_v18 = vpop.permute.xlu1 %756  ;;  %v767_v38 = vpop.permute.xlu2 %766 }
 0x13f   : > { %v753_v19 = vpop.permute.xlu0 %752  ;;  %v831_v22 = vunpack.c.l.b16 %v757_v18  ;;  %v882_v40 = vunpack.c.l.b16 %v767_v38 }
 0x140   : > { %v806_v25 = vunpack.c.l.b16 %v753_v19 }
 0x146   : > { %v759_v21 = vpop.permute.xlu1 %758 }
 0x147   : > { %v832_v23 = vunpack.c.l.b16 %v759_v21  ;;  %v755_v24 = vpop.permute.xlu0 %754 }
 0x148   : > { %v807_v26 = vunpack.c.l.b16 %v755_v24 }
 0x149   : > { %v833_v27 = vpack.c.b16 %v832_v23, %v831_v22 }
 0x14a   : > { %v808_v29 = vpack.c.b16 %v807_v26, %v806_v25 }
 0x14b   : > { %834 = vrot.lane.b32.xlu0 %v833_v27, %s2367_s28 }
 0x14c   : > { %809 = vrot.lane.b32.xlu2 %v808_v29, %s2367_s28 }
 0x14e   : > { %v771_v31 = vpop.permute.xlu1 %770 }
 0x14f   : > { %v907_v32 = vunpack.c.l.b16 %v771_v31  ;;  %v769_v33 = vpop.permute.xlu0 %768 }
 0x150   : > { %v906_v35 = vunpack.c.l.b16 %v769_v33 }
 0x152   : > { %v2605_v37 = vpack.c.b16 %v907_v32, %v906_v35 }
 0x154   : > { %859 = vrot.lane.b32.xlu2 %v2603_v36, %s2367_s28  ;;  %909 = vrot.lane.b32.xlu0 %v2605_v37, %s2367_s28 }
 0x156   : > { %v765_v39 = vpop.permute.xlu1 %764 }
 0x157   : > { %v881_v41 = vunpack.c.l.b16 %v765_v39  ;;  %v775_v42 = vpop.permute.xlu0 %774 }
 0x158   : > { %v932_v44 = vunpack.c.l.b16 %v775_v42 }
 0x159   : > { %v2611_v45 = vpack.c.b16 %v882_v40, %v881_v41 }
 0x15a   : > { %v2613_v46 = vpack.c.b16 %v932_v44, %v931_v43 }
 0x15c   : > { %884 = vrot.lane.b32.xlu2 %v2611_v45, %s2367_s28  ;;  %934 = vrot.lane.b32.xlu1 %v2613_v46, %s2367_s28 }
 0x15e   : > { %v779_v47 = vpop.permute.xlu1 %778 }
 0x15f   : > { %v957_v48 = vunpack.c.l.b16 %v779_v47  ;;  %v777_v49 = vpop.permute.xlu0 %776 }
 0x160   : > { %v956_v50 = vunpack.c.l.b16 %v777_v49 }
 0x162   : > { %v2619_v51 = vpack.c.b16 %v957_v48, %v956_v50 }
 0x164   : > { %959 = vrot.lane.b32.xlu0 %v2619_v51, %s2367_s28  ;;  %1238 = vrot.lane.b32.xlu1 %v833_v27, %s2368_s15 }
 0x166   : > { %v784_v52 = vpop.permute.xlu1 %783 }
 0x167   : > { %v790_v53 = vsel %vm785_vm3, %v784_v52, 0 }
 0x168   : > { %799 = vmatpush.bf16.xpose.msra.mxu1 %v790_v53 }
 0x16c   : > { %1180 = vrot.lane.b32.xlu0 %v782_v16, %s2368_s15 }
 0x16f   : > { %1985 = vmatmul.msk.bf16.vlgmr.msra.gmra.mxu1 %vm785_vm3, %v782_v16 }
 0x174   : > { %1211 = vrot.lane.b32.xlu0 %v808_v29, %s2368_s15 }
 0x1a6   : > { %v810_v54 = vpop.permute.xlu2 %809 }
 0x1a7   : > { %v815_v55 = vsel %vm785_vm3, %v810_v54, 0 }
 0x1a8   : > { %824 = vmatpush.bf16.xpose.msra.mxu2 %v815_v55 }
 0x1ae   : > { %v860_v56 = vpop.permute.xlu2 %859 }
 0x1af   : > { %1986 = vmatmul.msk.bf16.vlgmr.msra.gmra.mxu2 %vm785_vm3, %v808_v29  ;;  %v865_v57 = vsel %vm785_vm3, %v860_v56, 0 }
 0x1b0   : > { %874 = vmatpush.bf16.xpose.msrb.mxu0 %v865_v57 }
 0x1b6   : > { %v885_v58 = vpop.permute.xlu2 %884 }
 0x1b7   : > { %1988 = vmatmul.msk.bf16.vlgmr.msrb.gmra.mxu0 %vm785_vm3, %v2603_v36  ;;  %v890_v59 = vsel %vm785_vm3, %v885_v58, 0 }
 0x1b8   : > { %899 = vmatpush.bf16.xpose.msrb.mxu1 %v890_v59 }
 0x1bd   : > { %v835_v60 = vpop.permute.xlu0 %834 }
 0x1be   : > { %v840_v61 = vsel %vm785_vm3, %v835_v60, 0 }
 0x1bf   : > { %1989 = vmatmul.msk.bf16.vlgmr.msrb.gmra.mxu1 %vm785_vm3, %v2611_v45  ;;  %849 = vmatpush.bf16.xpose.msra.mxu3 %v840_v61 }
 0x1c6   : > { %v910_v62 = vpop.permute.xlu0 %909  ;;  %1987 = vmatmul.msk.bf16.vlgmr.msra.gmra.mxu3 %vm785_vm3, %v833_v27 }
 0x1c7   : > { %v915_v63 = vsel %vm785_vm3, %v910_v62, 0 }
 0x1c8   : > { %924 = vmatpush.bf16.xpose.msrb.mxu2 %v915_v63 }
 0x1ce   : > { %v935_v0 = vpop.permute.xlu1 %934 }
 0x1cf   : > { %1990 = vmatmul.msk.bf16.vlgmr.msrb.gmra.mxu2 %vm785_vm3, %v2605_v37  ;;  %v940_v1 = vsel %vm785_vm3, %v935_v0, 0 }
 0x1d0   : > { %949 = vmatpush.bf16.xpose.msrb.mxu3 %v940_v1 }
 0x1d6   : > { %v960_v5 = vpop.permute.xlu0 %959  ;;  %v1239_v6 = vpop.permute.xlu1 %1238 }
 0x1d7   : > { %v965_v7 = vsel %vm785_vm3, %v960_v5, 0  ;;  %v1244_v8 = vand.u32 %v1239_v6, %v2642_v4  ;;  %1991 = vmatmul.msk.bf16.vlgmr.msrb.gmra.mxu3 %vm785_vm3, %v2613_v46 }
 0x1d8   : > { %974 = vmatpush.bf16.xpose.msra.mxu0 %v965_v7 }
 0x1d9   : > { %1253 = vmatpush.bf16.msra.mxu3 %v1244_v8 }
 0x1de   : > { %v1181_v9 = vpop.permute.xlu0 %1180 }
 0x1df   : > { %v1190_v10 = vand.u32 %v2642_v4, %v1181_v9  ;;  %1992 = vmatmul.msk.bf16.vlgmr.msra.gmra.mxu0 %vm785_vm3, %v2619_v51 }
 0x1e1   : > { %1199 = vmatpush.bf16.msra.mxu1 %v1190_v10 }
 0x1e6   : > { %v1212_v11 = vpop.permute.xlu0 %1211 }
 0x1e7   : > { %v1217_v12 = vand.u32 %v1212_v11, %v2642_v4 }
 0x1e9   : > { %1226 = vmatpush.bf16.msra.mxu2 %v1217_v12 }
 0x1ec   : > { %v801_v13 = vpop.f32.mrf.mxu1 }
 0x1ed   : > { %v982_v14 = vsel %vm981_vm6, %v801_v13, -inf }
 0x1ee   : > { %983 = vmax.xlane.f32.xlu1 %v982_v14 }
 0x1f4   : > { %v803_v15 = vpop.f32.mrf.mxu1 }
 0x1f5   : > { %v986_v16 = vsel %vm985_vm7, %v803_v15, -inf }
 0x1f6   : > { %987 = vmax.xlane.f32.xlu2 %v986_v16 }
 0x232   : > { %v826_v17 = vpop.f32.mrf.mxu2 }
 0x233   : > { %v989_v18 = vsel %vm981_vm6, %v826_v17, -inf }
 0x234   : > { %v876_v19 = vpop.f32.mrf.mxu0  ;;  %990 = vmax.xlane.f32.xlu1 %v989_v18 }
 0x235   : > { %v1001_v20 = vsel %vm981_vm6, %v876_v19, -inf }
 0x236   : > { %1002 = vmax.xlane.f32.xlu0 %v1001_v20 }
 0x23a   : > { %v2679_v42 = vpop.f32.mrf.mxu2 }
 0x23b   : > { %v992_v48 = vsel %vm985_vm7, %v2679_v42, -inf }
 0x23c   : > { %v2656_v21 = vpop.f32.mrf.mxu0  ;;  %v2658_v22 = vpop.f32.mrf.mxu1 }
 0x23d   : > { %v1004_v23 = vsel %vm985_vm7, %v2656_v21, -inf  ;;  %v1007_v24 = vsel %vm981_vm6, %v2658_v22, -inf }
 0x23e   : > { %1005 = vmax.xlane.f32.xlu1 %v1004_v23  ;;  %1008 = vmax.xlane.f32.xlu0 %v1007_v24 }
 0x244   : > { %v2664_v25 = vpop.f32.mrf.mxu1 }
 0x245   : > { %v1010_v26 = vsel %vm985_vm7, %v2664_v25, -inf }
 0x246   : > { %1011 = vmax.xlane.f32.xlu1 %v1010_v26 }
 0x249   : > { %v851_v27 = vpop.f32.mrf.mxu3 }
 0x24a   : > { %v995_v28 = vsel %vm981_vm6, %v851_v27, -inf }
 0x24b   : > { %996 = vmax.xlane.f32.xlu0 %v995_v28 }
 0x251   : > { %v2669_v29 = vpop.f32.mrf.mxu3 }
 0x252   : > { %v2689_v49 = vpop.f32.mrf.mxu2  ;;  %v998_v53 = vsel %vm985_vm7, %v2669_v29, -inf }
 0x253   : > { %v1013_v57 = vsel %vm981_vm6, %v2689_v49, -inf }
 0x25a   : > { %v2671_v30 = vpop.f32.mrf.mxu3  ;;  %v2697_v54 = vpop.f32.mrf.mxu2 }
 0x25b   : > { %v1019_v31 = vsel %vm981_vm6, %v2671_v30, -inf  ;;  %v1016_v55 = vsel %vm985_vm7, %v2697_v54, -inf }
 0x25c   : > { %1020 = vmax.xlane.f32.xlu1 %v1019_v31  ;;  %v2681_v43 = vpop.f32.mrf.mxu0 }
 0x25d   : > { %v1025_v56 = vsel %vm981_vm6, %v2681_v43, -inf }
 0x261   : > { %v984_v32 = vpop.xlane.xlu1 %983 }
 0x262   : > { %v1031_v33 = vsub.f32 %v801_v13, %v984_v32 }
 0x264   : > { %v1047_v34 = vmul.f32 1.442695, %v1031_v33  ;;  %v2691_v50 = vpop.f32.mrf.mxu0 }
 0x265   : > { %v1028_v52 = vsel %vm985_vm7, %v2691_v50, -inf }
 0x266   : > { %2186 = vpow2.f32 %v1047_v34 }
 0x269   : > { %v988_v35 = vpop.xlane.xlu2 %987 }
 0x26a   : > { %v1032_v38 = vsub.f32 %v803_v15, %v988_v35  ;;  %v2723_v15 = vpop.f32.mrf.mxu3 }
 0x26c   : > { %v2675_v39 = vpop.eup %2186  ;;  %v1049_v40 = vmul.f32 1.442695, %v1032_v38 }
 0x26d   : > { %v1079_v41 = vsel %vm981_vm6, %v2675_v39, 0.0 }
 0x26e   : > { %2188 = vpow2.f32 %v1049_v40  ;;  %1080 = vadd.xlane.f32.xlu2 %v1079_v41 }
 0x274   : > { %v2683_v44 = vpop.eup %2188 }
 0x275   : > { %v1082_v47 = vsel %vm985_vm7, %v2683_v44, 0.0 }
 0x276   : > { %1083 = vadd.xlane.f32.xlu0 %v1082_v47  ;;  %993 = vmax.xlane.f32.xlu2 %v992_v48 }
 0x27e   : > { %1029 = vmax.xlane.f32.xlu0 %v1028_v52  ;;  %999 = vmax.xlane.f32.xlu2 %v998_v53 }
 0x286   : > { %1017 = vmax.xlane.f32.xlu0 %v1016_v55  ;;  %1026 = vmax.xlane.f32.xlu2 %v1025_v56 }
 0x28e   : > { %1014 = vmax.xlane.f32.xlu2 %v1013_v57 }
 0x29a   : > { %1265 = vrot.lane.b32.xlu0 %v2603_v36, %s2368_s15 }
 0x2a6   : > { %1319 = vrot.lane.b32.xlu2 %v2605_v37, %s2368_s15 }
 0x2a7   : > { %v991_v58 = vpop.xlane.xlu1 %990 }
 0x2a8   : > { %v1033_v61 = vsub.f32 %v826_v17, %v991_v58  ;;  %v1022_v17 = vsel %vm985_vm7, %v2723_v15, -inf }
 0x2a9   : > { %v1003_v59 = vpop.xlane.xlu0 %1002 }
 0x2aa   : > { %v1037_v60 = vsub.f32 %v876_v19, %v1003_v59  ;;  %v1051_v63 = vmul.f32 1.442695, %v1033_v61 }
 0x2ac   : > { %v1059_v62 = vmul.f32 1.442695, %v1037_v60 }
 0x2ae   : > { %2190 = vpow2.f32 %v1059_v62 }
 0x2af   : > { %2192 = vpow2.f32 %v1051_v63 }
 0x2b1   : > { %v1006_v1 = vpop.xlane.xlu1 %1005  ;;  %v1009_v3 = vpop.xlane.xlu0 %1008 }
 0x2b2   : > { %v1039_v10 = vsub.f32 %v2658_v22, %v1009_v3  ;;  %v1038_v16 = vsub.f32 %v2656_v21, %v1006_v1 }
 0x2b4   : > { %v2709_v0 = vpop.eup %2190  ;;  %v1063_v13 = vmul.f32 1.442695, %v1039_v10  ;;  %v1061_v19 = vmul.f32 1.442695, %v1038_v16 }
 0x2b5   : > { %v1097_v2 = vsel %vm981_vm6, %v2709_v0, 0.0  ;;  %v2713_v36 = vpop.eup %2192 }
 0x2b6   : > { %1098 = vadd.xlane.f32.xlu1 %v1097_v2  ;;  %v1085_v37 = vsel %vm981_vm6, %v2713_v36, 0.0 }
 0x2b9   : > { %v1012_v5 = vpop.xlane.xlu1 %1011 }
 0x2ba   : > { %v1040_v8 = vsub.f32 %v2664_v25, %v1012_v5 }
 0x2bc   : > { %v1065_v11 = vmul.f32 1.442695, %v1040_v8 }
 0x2be   : > { %1086 = vadd.xlane.f32.xlu1 %v1085_v37  ;;  %v997_v6 = vpop.xlane.xlu0 %996 }
 0x2bf   : > { %v1035_v7 = vsub.f32 %v851_v27, %v997_v6 }
 0x2c1   : > { %v1055_v9 = vmul.f32 1.442695, %v1035_v7 }
 0x2c3   : > { %2194 = vpow2.f32 %v1055_v9 }
 0x2c4   : > { %2196 = vpow2.f32 %v1065_v11 }
 0x2c5   : > { %2198 = vpow2.f32 %v1063_v13 }
 0x2c6   : > { %2200 = vpow2.f32 %v1061_v19 }
 0x2c9   : > { %v2719_v12 = vpop.eup %2194 }
 0x2ca   : > { %v1091_v14 = vsel %vm981_vm6, %v2719_v12, 0.0  ;;  %v2728_v18 = vpop.eup %2196 }
 0x2cb   : > { %1092 = vadd.xlane.f32.xlu0 %v1091_v14  ;;  %v1106_v20 = vsel %vm985_vm7, %v2728_v18, 0.0  ;;  %v2732_v22 = vpop.eup %2198 }
 0x2cc   : > { %v1103_v23 = vsel %vm981_vm6, %v2732_v22, 0.0  ;;  %v2736_v24 = vpop.eup %2200 }
 0x2cd   : > { %v1100_v21 = vsel %vm985_vm7, %v2736_v24, 0.0 }
 0x2cf   : > { %1023 = vmax.xlane.f32.xlu2 %v1022_v17  ;;  %v1021_v60 = vpop.xlane.xlu1 %1020 }
 0x2d0   : > { %v1043_v2 = vsub.f32 %v2671_v30, %v1021_v60 }
 0x2d2   : > { %v1071_v3 = vmul.f32 1.442695, %v1043_v2 }
 0x2d3   : > { %1107 = vadd.xlane.f32.xlu0 %v1106_v20 }
 0x2d7   : > { %1104 = vadd.xlane.f32.xlu2 %v1103_v23 }
 0x2df   : > { %1101 = vadd.xlane.f32.xlu2 %v1100_v21 }
 0x2e1   : > { %v1081_v25 = vpop.xlane.xlu2 %1080 }
 0x2e2   : > { %2202 = vrcp.f32 %v1081_v25 }
 0x2e7   : > { %1292 = vrot.lane.b32.xlu0 %v2611_v45, %s2368_s15 }
 0x2e8   : > { %v2203_v28 = vpop.eup %2202 }
 0x2e9   : > { %v1084_v26 = vpop.xlane.xlu0 %1083  ;;  %v994_v27 = vpop.xlane.xlu2 %993  ;;  %v1143_v33 = vmul.f32 %v2203_v28, %v2675_v39 }
 0x2ea   : > { %2204 = vrcp.f32 %v1084_v26  ;;  %v1034_v31 = vsub.f32 %v2679_v42, %v994_v27 }
 0x2eb   : > { %v1159_v35 = vpack.c.bf16 %v1143_v33, %v1143_v33 }
 0x2ec   : > { %v1053_v32 = vmul.f32 1.442695, %v1034_v31 }
 0x2ed   : > { %v1177_v52 = vunpack.c.l.b16 %v1159_v35 }
 0x2ee   : > { %2206 = vpow2.f32 %v1053_v32 }
 0x2f0   : > { %v2205_v34 = vpop.eup %2204 }
 0x2f1   : > { %v1144_v38 = vmul.f32 %v2205_v34, %v2683_v44  ;;  %v1000_v40 = vpop.xlane.xlu2 %999  ;;  %v1030_v56 = vpop.xlane.xlu0 %1029 }
 0x2f2   : > { %v1036_v41 = vsub.f32 %v2669_v29, %v1000_v40 }
 0x2f3   : > { %v1160_v47 = vpack.c.bf16 %v1144_v38, %v1144_v38 }
 0x2f4   : > { %v2746_v48 = vpop.eup %2206  ;;  %v1057_v45 = vmul.f32 1.442695, %v1036_v41 }
 0x2f5   : > { %v1178_v53 = vunpack.c.l.b16 %v1160_v47  ;;  %v1088_v42 = vsel %vm985_vm7, %v2746_v48, 0.0 }
 0x2f6   : > { %1089 = vadd.xlane.f32.xlu2 %v1088_v42  ;;  %2208 = vpow2.f32 %v1057_v45 }
 0x2f7   : > { %v1179_v55 = vpack.c.b16 %v1178_v53, %v1177_v52 }
 0x2f9   : > { %1993 = vmatmul.msk.bf16.vlgmr.msra.gmra.mxu1 %vm981_vm6, %v1179_v55  ;;  %v1027_v39 = vpop.xlane.xlu2 %1026  ;;  %v1018_v62 = vpop.xlane.xlu0 %1017 }
 0x2fa   : > { %v1045_v44 = vsub.f32 %v2681_v43, %v1027_v39  ;;  %v1042_v11 = vsub.f32 %v2697_v54, %v1018_v62 }
 0x2fc   : > { %v1075_v57 = vmul.f32 1.442695, %v1045_v44  ;;  %v2752_v29 = vpop.eup %2208  ;;  %v1069_v14 = vmul.f32 1.442695, %v1042_v11 }
 0x2fd   : > { %v1094_v58 = vsel %vm985_vm7, %v2752_v29, 0.0 }
 0x2fe   : > { %2210 = vpow2.f32 %v1075_v57  ;;  %1095 = vadd.xlane.f32.xlu1 %v1094_v58 }
 0x301   : > { %v1015_v59 = vpop.xlane.xlu2 %1014 }
 0x302   : > { %v1041_v61 = vsub.f32 %v2689_v49, %v1015_v59  ;;  %v1046_v49 = vsub.f32 %v2691_v50, %v1030_v56 }
 0x304   : > { %v1067_v63 = vmul.f32 1.442695, %v1041_v61  ;;  %v2757_v1 = vpop.eup %2210  ;;  %v1077_v9 = vmul.f32 1.442695, %v1046_v49 }
 0x305   : > { %v1121_v43 = vsel %vm981_vm6, %v2757_v1, 0.0 }
 0x306   : > { %2212 = vpow2.f32 %v1067_v63  ;;  %1122 = vadd.xlane.f32.xlu2 %v1121_v43 }
 0x307   : > { %2214 = vpow2.f32 %v1071_v3 }
 0x308   : > { %2216 = vpow2.f32 %v1077_v9 }
 0x309   : > { %v1320_v37 = vpop.permute.xlu2 %1319  ;;  %2218 = vpow2.f32 %v1069_v14 }
 0x30a   : > { %v1325_v5 = vand.u32 %v1320_v37, %v2642_v4 }
 0x30c   : > { %v2763_v6 = vpop.eup %2212  ;;  %v1266_v7 = vpop.permute.xlu0 %1265  ;;  %1334 = vmatpush.bf16.msrb.mxu2 %v1325_v5 }
 0x30d   : > { %v1271_v8 = vand.u32 %v1266_v7, %v2642_v4  ;;  %v1109_v30 = vsel %vm981_vm6, %v2763_v6, 0.0  ;;  %v2769_v10 = vpop.eup %2214 }
 0x30e   : > { %1110 = vadd.xlane.f32.xlu2 %v1109_v30  ;;  %v1115_v13 = vsel %vm981_vm6, %v2769_v10, 0.0  ;;  %v2774_v16 = vpop.eup %2216 }
 0x30f   : > { %1280 = vmatpush.bf16.msrb.mxu0 %v1271_v8  ;;  %v1124_v50 = vsel %vm985_vm7, %v2774_v16, 0.0  ;;  %v2778_v17 = vpop.eup %2218 }
 0x310   : > { %v1112_v19 = vsel %vm985_vm7, %v2778_v17, 0.0 }
 0x316   : > { %1116 = vadd.xlane.f32.xlu2 %v1115_v13 }
 0x31e   : > { %1125 = vadd.xlane.f32.xlu2 %v1124_v50 }
 0x326   : > { %1113 = vadd.xlane.f32.xlu2 %v1112_v19 }
 0x329   : > { %v1099_v26 = vpop.xlane.xlu1 %1098 }
 0x331   : > { %v1087_v58 = vpop.xlane.xlu1 %1086 }
 0x33e   : > { %v1093_v20 = vpop.xlane.xlu0 %1092  ;;  %1373 = vrot.lane.b32.xlu2 %v2619_v51, %s2368_s15 }
 0x342   : > { %v1024_v54 = vpop.xlane.xlu2 %1023 }
 0x343   : > { %v1044_v23 = vsub.f32 %v2723_v15, %v1024_v54 }
 0x345   : > { %v1073_v21 = vmul.f32 1.442695, %v1044_v23 }
 0x346   : > { %v1108_v25 = vpop.xlane.xlu0 %1107 }
 0x347   : > { %2220 = vpow2.f32 %v1073_v21 }
 0x348   : > { %2222 = vrcp.f32 %v1108_v25 }
 0x34a   : > { %v1105_v27 = vpop.xlane.xlu2 %1104 }
 0x34b   : > { %2224 = vrcp.f32 %v1105_v27 }
 0x34c   : > { %2226 = vrcp.f32 %v1099_v26 }
 0x34d   : > { %v2785_v28 = vpop.eup %2220 }
 0x34e   : > { %v1118_v31 = vsel %vm985_vm7, %v2785_v28, 0.0  ;;  %v2223_v32 = vpop.eup %2222  ;;  %vm1652_vm7 = vcmask 523264  }
 0x34f   : > { %1119 = vadd.xlane.f32.xlu1 %v1118_v31  ;;  %v1152_v35 = vmul.f32 %v2223_v32, %v2728_v18 }
 0x351   : > { %v2225_v33 = vpop.eup %2224  ;;  %v1168_v41 = vpack.c.bf16 %v1152_v35, %v1152_v35 }
 0x352   : > { %v1151_v51 = vmul.f32 %v2225_v33, %v2732_v22  ;;  %v1102_v34 = vpop.xlane.xlu2 %1101  ;;  %v2227_v15 = vpop.eup %2226 }
 0x353   : > { %2228 = vrcp.f32 %v1102_v34  ;;  %v1149_v40 = vmul.f32 %v2227_v15, %v2709_v0  ;;  %v1290_v39 = vunpack.c.l.b16 %v1168_v41 }
 0x354   : > { %v1167_v38 = vpack.c.bf16 %v1151_v51, %v1151_v51  ;;  %2230 = vrcp.f32 %v1087_v58 }
 0x355   : > { %v1165_v53 = vpack.c.bf16 %v1149_v40, %v1149_v40 }
 0x356   : > { %v1289_v45 = vunpack.c.l.b16 %v1167_v38 }
 0x357   : > { %v1262_v44 = vunpack.c.l.b16 %v1165_v53 }
 0x358   : > { %v1291_v22 = vpack.c.b16 %v1290_v39, %v1289_v45 }
 0x359   : > { %v2229_v47 = vpop.eup %2228  ;;  %v1293_v52 = vpop.permute.xlu0 %1292 }
 0x35a   : > { %v1150_v42 = vmul.f32 %v2229_v47, %v2736_v24  ;;  %v1298_v55 = vand.u32 %v1293_v52, %v2642_v4  ;;  %v2231_v24 = vpop.eup %2230 }
 0x35b   : > { %v1145_v59 = vmul.f32 %v2231_v24, %v2713_v36 }
 0x35c   : > { %v1166_v56 = vpack.c.bf16 %v1150_v42, %v1150_v42  ;;  %1307 = vmatpush.bf16.msrb.mxu1 %v1298_v55 }
 0x35d   : > { %v1161_v61 = vpack.c.bf16 %v1145_v59, %v1145_v59 }
 0x35e   : > { %v1263_v57 = vunpack.c.l.b16 %v1166_v56 }
 0x35f   : > { %1997 = vmatmul.msk.bf16.vlgmr.msrb.gmra.mxu1 %vm981_vm6, %v1291_v22  ;;  %v1208_v3 = vunpack.c.l.b16 %v1161_v61 }
 0x360   : > { %v1264_v18 = vpack.c.b16 %v1263_v57, %v1262_v44 }
 0x362   : > { %1996 = vmatmul.msk.bf16.vlgmr.msrb.gmra.mxu0 %vm981_vm6, %v1264_v18 }
 0x368   : > { %1346 = vrot.lane.b32.xlu1 %v2613_v46, %s2368_s15 }
 0x369   : > { %v1090_v0 = vpop.xlane.xlu2 %1089 }
 0x36a   : > { %2232 = vrcp.f32 %v1090_v0 }
 0x36b   : > { %2234 = vrcp.f32 %v1093_v20 }
 0x370   : > { %v2233_v60 = vpop.eup %2232 }
 0x371   : > { %v1146_v62 = vmul.f32 %v2233_v60, %v2746_v48  ;;  %v1096_v63 = vpop.xlane.xlu1 %1095  ;;  %v2235_v2 = vpop.eup %2234 }
 0x372   : > { %2236 = vrcp.f32 %v1096_v63  ;;  %v1147_v5 = vmul.f32 %v2235_v2, %v2719_v12 }
 0x373   : > { %v1162_v43 = vpack.c.bf16 %v1146_v62, %v1146_v62 }
 0x374   : > { %v1163_v49 = vpack.c.bf16 %v1147_v5, %v1147_v5 }
 0x375   : > { %v1209_v37 = vunpack.c.l.b16 %v1162_v43 }
 0x376   : > { %v1235_v9 = vunpack.c.l.b16 %v1163_v49 }
 0x377   : > { %v1210_v7 = vpack.c.b16 %v1209_v37, %v1208_v3 }
 0x378   : > { %v2237_v46 = vpop.eup %2236 }
 0x379   : > { %1994 = vmatmul.msk.bf16.vlgmr.msra.gmra.mxu2 %vm981_vm6, %v1210_v7  ;;  %v1148_v36 = vmul.f32 %v2237_v46, %v2752_v29  ;;  %v1123_v8 = vpop.xlane.xlu2 %1122 }
 0x37a   : > { %2238 = vrcp.f32 %v1123_v8  ;;  %v2047_v8 = vld [vmem:[%s3002_s27 + $0x8] sm:$0xff] }
 0x37b   : > { %v1164_v30 = vpack.c.bf16 %v1148_v36, %v1148_v36  ;;  %1501 = vmatpush.bf16.msra.mxu1 %v2047_v8 }
 0x37d   : > { %v1236_v11 = vunpack.c.l.b16 %v1164_v30  ;;  %v2046_v30 = vld [vmem:[%s3002_s27] sm:$0xff]  ;;  %s3005_s27 = scalar_lea.vmem %s2951_s8, %s2532_s18 }
 0x37f   : > { %v1237_v48 = vpack.c.b16 %v1236_v11, %v1235_v9  ;;  %1502 = vmatpush.bf16.msra.mxu1 %v2046_v30 }
 0x380   : > { %v2239_v12 = vpop.eup %2238 }
 0x381   : > { %v1111_v13 = vpop.xlane.xlu2 %1110  ;;  %1995 = vmatmul.msk.bf16.vlgmr.msra.gmra.mxu3 %vm981_vm6, %v1237_v48  ;;  %v1157_v29 = vmul.f32 %v2239_v12, %v2757_v1 }
 0x383   : > { %v1173_v26 = vpack.c.bf16 %v1157_v29, %v1157_v29 }
 0x385   : > { %v1370_v15 = vunpack.c.l.b16 %v1173_v26 }
 0x389   : > { %v1117_v14 = vpop.xlane.xlu2 %1116 }
 0x391   : > { %v1126_v50 = vpop.xlane.xlu2 %1125 }
 0x392   : > { %2240 = vrcp.f32 %v1126_v50 }
 0x393   : > { %2242 = vrcp.f32 %v1111_v13 }
 0x398   : > { %v2241_v19 = vpop.eup %2240 }
 0x399   : > { %v1158_v20 = vmul.f32 %v2241_v19, %v2774_v16  ;;  %v1114_v54 = vpop.xlane.xlu2 %1113  ;;  %v2243_v23 = vpop.eup %2242 }
 0x39a   : > { %2244 = vrcp.f32 %v1114_v54  ;;  %v1153_v21 = vmul.f32 %v2243_v23, %v2763_v6  ;;  %v2811_v6 = vpop.f32.mrf.mxu1 }
 0x39b   : > { %v1174_v25 = vpack.c.bf16 %v1158_v20, %v1158_v20 }
 0x39c   : > { %v1169_v31 = vpack.c.bf16 %v1153_v21, %v1153_v21 }
 0x39d   : > { %v1371_v32 = vunpack.c.l.b16 %v1174_v25 }
 0x39e   : > { %v1316_v16 = vunpack.c.l.b16 %v1169_v31 }
 0x39f   : > { %v1372_v38 = vpack.c.b16 %v1371_v32, %v1370_v15 }
 0x3a0   : > { %v2245_v27 = vpop.eup %2244 }
 0x3a1   : > { %v1154_v33 = vmul.f32 %v2245_v27, %v2778_v17  ;;  %v1374_v51 = vpop.permute.xlu2 %1373 }
 0x3a2   : > { %v1379_v34 = vand.u32 %v1374_v51, %v2642_v4  ;;  %v1203_v52 = vpop.f32.mrf.mxu1 }
 0x3a3   : > { %v1170_v35 = vpack.c.bf16 %v1154_v33, %v1154_v33 }
 0x3a4   : > { %1388 = vmatpush.bf16.msra.mxu0 %v1379_v34 }
 0x3a5   : > { %v1317_v40 = vunpack.c.l.b16 %v1170_v35 }
 0x3a7   : > { %v1318_v41 = vpack.c.b16 %v1317_v40, %v1316_v16  ;;  %2000 = vmatmul.msk.bf16.vlgmr.msra.gmra.mxu0 %vm981_vm6, %v1372_v38 }
 0x3a9   : > { %1998 = vmatmul.msk.bf16.vlgmr.msrb.gmra.mxu2 %vm981_vm6, %v1318_v41 }
 0x3c2   : > { %v1120_v1 = vpop.xlane.xlu1 %1119 }
 0x3c3   : > { %2246 = vrcp.f32 %v1120_v1 }
 0x3c4   : > { %2248 = vrcp.f32 %v1117_v14 }
 0x3c9   : > { %v2247_v17 = vpop.eup %2246 }
 0x3ca   : > { %v2249_v47 = vpop.eup %2248  ;;  %v1156_v45 = vmul.f32 %v2247_v17, %v2785_v28 }
 0x3cb   : > { %v1155_v53 = vmul.f32 %v2249_v47, %v2769_v10 }
 0x3cc   : > { %v1172_v42 = vpack.c.bf16 %v1156_v45, %v1156_v45 }
 0x3cd   : > { %v1171_v55 = vpack.c.bf16 %v1155_v53, %v1155_v53 }
 0x3ce   : > { %v1344_v39 = vunpack.c.l.b16 %v1172_v42 }
 0x3cf   : > { %v1343_v44 = vunpack.c.l.b16 %v1171_v55 }
 0x3d1   : > { %v1345_v18 = vpack.c.b16 %v1344_v39, %v1343_v44  ;;  %v2179_v39 = vld [vmem:[%s3003_s20] ss:$0 sm:$0xff] }
 0x3d2   : > { %v2260_v44 = vld [vmem:[#allocation2] sm:$0xff] }
 0x3da   : > { %v1347_v56 = vpop.permute.xlu1 %1346 }
 0x3db   : > { %v1352_v22 = vand.u32 %v1347_v56, %v2642_v4 }
 0x3dc   : > { %v1309_v57 = vpop.f32.mrf.mxu1 }
 0x3dd   : > { %1361 = vmatpush.bf16.msrb.mxu3 %v1352_v22 }
 0x3df   : > { %v1282_v58 = vpop.f32.mrf.mxu0 }
 0x3e0   : > { %1999 = vmatmul.msk.bf16.vlgmr.msrb.gmra.mxu3 %vm981_vm6, %v1345_v18 }
 0x3e4   : > { %v1311_v0 = vpop.f32.mrf.mxu1 }
 0x3e5   : > { %v2148_v24 = vpack.i.bf16 %v1311_v0, %v1309_v57 }
 0x3e7   : > { %2149 = vrot.lane.b32.xlu0 %v2148_v24, %s2370_s25  ;;  %v1284_v28 = vpop.f32.mrf.mxu0  ;;  %v2261_v24 = vld [vmem:[#allocation2 + $0x8] sm:$0x1] }
 0x3e8   : > { %v2143_v59 = vpack.i.bf16 %v1284_v28, %v1282_v58 }
 0x3ea   : > { %2144 = vrot.lane.b32.xlu2 %v2143_v59, %s2371_s5  ;;  %s3004_s5 = scalar_lea.vmem %s2949_s6, %s2532_s18 }
 0x3fc   : > { %v1228_v10 = vpop.f32.mrf.mxu2 }
 0x404   : > { %v1230_v60 = vpop.f32.mrf.mxu2  ;;  %v1255_v62 = vpop.f32.mrf.mxu3 }
 0x405   : > { %v2153_v61 = vpack.i.bf16 %v1230_v60, %v1228_v10  ;;  %v2377_v10 = vmov 32.0  }
 0x406   : > { %2250 = vrcp.f32 %v2377_v10 }
 0x407   : > { %2154 = vrot.lane.b32.xlu2 %v2153_v61, %s2372_s14 }
 0x40c   : > { %v1257_v4 = vpop.f32.mrf.mxu3  ;;  %v2251_v60 = vpop.eup %2250 }
 0x40d   : > { %v2158_v63 = vpack.i.bf16 %v1257_v4, %v1255_v62  ;;  %v1519_v61 = vmul.f32 32.0, %v2251_v60  ;;  %vm1523_vm15 = vweird.f32 %v2251_v60 }
 0x40f   : > { %2159 = vrot.lane.b32.xlu1 %v2158_v63, %s2373_s22  ;;  %v1520_v62 = vsub.f32 1.0, %v1519_v61 }
 0x411   : > { %v1521_v4 = vmul.f32 %v2251_v60, %v1520_v62 }
 0x413   : > { %v1522_v63 = vadd.f32 %v2251_v60, %v1521_v4 }
 0x424   : > { %v1390_v2 = vpop.f32.mrf.mxu0 }
 0x42c   : > { %v1336_v43 = vpop.f32.mrf.mxu2  ;;  %v1392_v3 = vpop.f32.mrf.mxu0 }
 0x42d   : > { %v2173_v37 = vpack.i.bf16 %v1392_v3, %v1390_v2  ;;  %v2830_v2 = vsel %vm1523_vm15, %v2251_v60, %v1522_v63 }
 0x42f   : > { %2174 = vrot.lane.b32.xlu0 %v2173_v37, %s2374_s21 }
 0x434   : > { %v1338_v5 = vpop.f32.mrf.mxu2 }
 0x435   : > { %v2163_v7 = vpack.i.bf16 %v1338_v5, %v1336_v43 }
 0x437   : > { %2164 = vrot.lane.b32.xlu1 %v2163_v7, %s2375_s16 }
 0x444   : > { %v2145_v9 = vpop.permute.xlu2 %2144 }
 0x445   : > { %v2146_v29 = vunpack.i.l.bf16 %v2145_v9  ;;  %v2147_v26 = vunpack.i.h.bf16 %v2145_v9 }
 0x459   : > { %v2150_v12 = vpop.permute.xlu0 %2149 }
 0x45a   : > { %v2151_v31 = vunpack.i.l.bf16 %v2150_v12  ;;  %v2152_v34 = vunpack.i.h.bf16 %v2150_v12 }
 0x461   : > { %v2155_v11 = vpop.permute.xlu2 %2154 }
 0x462   : > { %v2156_v13 = vunpack.i.l.bf16 %v2155_v11  ;;  %v2157_v14 = vunpack.i.h.bf16 %v2155_v11  ;;  %v2049_v11 = vld [vmem:[%s2557_s0 + $0x8] sm:$0xff] }
 0x463   : > { %v1363_v46 = vpop.f32.mrf.mxu3  ;;  %1605 = vmatpush.bf16.msra.mxu2 %v2049_v11 }
 0x464   : > { %v1451_v20 = vsel %vm785_vm3, %v2811_v6, %v2156_v13  ;;  %v1452_v54 = vsel %vm785_vm3, %v1203_v52, %v2157_v14  ;;  %v2048_v14 = vld [vmem:[%s2557_s0] sm:$0xff] }
 0x467   : > { %1606 = vmatpush.bf16.msra.mxu2 %v2048_v14 }
 0x46b   : > { %v1365_v49 = vpop.f32.mrf.mxu3 }
 0x46c   : > { %v2168_v36 = vpack.i.bf16 %v1365_v49, %v1363_v46 }
 0x46e   : > { %2169 = vrot.lane.b32.xlu2 %v2168_v36, %s2376_s23 }
 0x481   : > { %v2160_v48 = vpop.permute.xlu1 %2159 }
 0x482   : > { %v2161_v50 = vunpack.i.l.bf16 %v2160_v48  ;;  %v2162_v19 = vunpack.i.h.bf16 %v2160_v48 }
 0x484   : > { %v1454_v23 = vsel %vm1453_vm8, %v1451_v20, %v2161_v50  ;;  %v1455_v21 = vsel %vm1453_vm8, %v1452_v54, %v2162_v19 }
 0x485   : > { %v1457_v27 = vsel %vm1456_vm9, %v1454_v23, %v2146_v29  ;;  %v1458_v32 = vsel %vm1456_vm9, %v1455_v21, %v2147_v26 }
 0x486   : > { %v1460_v35 = vsel %vm1459_vm10, %v1457_v27, %v2151_v31  ;;  %v1461_v38 = vsel %vm1459_vm10, %v1458_v32, %v2152_v34  ;;  %v2180_v34 = vld [vmem:[%s686_s26] ss:$0 sm:$0xff] }
 0x4a1   : > { %v2175_v15 = vpop.permute.xlu0 %2174 }
 0x4a2   : > { %v2177_v1 = vunpack.i.h.bf16 %v2175_v15  ;;  %v2176_v6 = vunpack.i.l.bf16 %v2175_v15 }
 0x4a9   : > { %v2165_v25 = vpop.permute.xlu1 %2164 }
 0x4aa   : > { %v2167_v33 = vunpack.i.h.bf16 %v2165_v25  ;;  %v2166_v51 = vunpack.i.l.bf16 %v2165_v25 }
 0x4ac   : > { %v1463_v17 = vsel %vm1462_vm11, %v1460_v35, %v2166_v51  ;;  %v1464_v47 = vsel %vm1462_vm11, %v1461_v38, %v2167_v33  ;;  %v2181_v38 = vld [vmem:[%s689_s29] ss:$0 sm:$0xff] }
 0x4c8   : > { %v2170_v16 = vpop.permute.xlu2 %2169 }
 0x4c9   : > { %v2172_v40 = vunpack.i.h.bf16 %v2170_v16  ;;  %v2171_v41 = vunpack.i.l.bf16 %v2170_v16 }
 0x4cb   : > { %v1466_v45 = vsel %vm1465_vm12, %v1463_v17, %v2171_v41  ;;  %v1467_v52 = vsel %vm1465_vm12, %v1464_v47, %v2172_v40 }
 0x4cc   : > { %v1469_v53 = vsel %vm1468_vm13, %v1466_v45, %v2176_v6  ;;  %v1470_v42 = vsel %vm1468_vm13, %v1467_v52, %v2177_v1  ;;  %v2053_v45 = vld [vmem:[%s2571_s13 + $0x18] sm:$0xff]  ;;  %v2052_v52 = vld [vmem:[%s2571_s13 + $0x10] sm:$0xff] }
 0x4cd   : > { %v1471_v55 = vpack.c.bf16 %v1470_v42, %v1469_v53  ;;  %1660 = vmatpush.bf16.msra.mxu3 %v2053_v45  ;;  %v2051_v53 = vld [vmem:[%s2571_s13 + $0x8] sm:$0xff]  ;;  %v2050_v42 = vld [vmem:[%s2571_s13] sm:$0xff] }
 0x4cf   : > { %2009 = vmatmul.msk.bf16.vlgmr.msra.gmra.mxu1 %vm730_vm2, %v1471_v55 }
 0x4d1   : > { %1661 = vmatpush.bf16.msra.mxu3 %v2052_v52 }
 0x4d5   : > { %1662 = vmatpush.bf16.msra.mxu3 %v2051_v53 }
 0x4d9   : > { %1663 = vmatpush.bf16.msra.mxu3 %v2050_v42 }
 0x54c   : > { %v1504_v56 = vpop.f32.mrf.mxu1 }
 0x54d   : > { %v1505_v22 = vadd.f32 %v2179_v39, %v1504_v56 }
 0x54f   : > { %v1509_v57 = vadd.f32 %v2260_v44, %v1505_v22 }
 0x551   : > { %v1511_v18 = vsel %vm730_vm2, %v1509_v57, 0.0 }
 0x552   : > { %1512 = vadd.xlane.f32.xlu1 %v1511_v18 }
 0x554   : > { %v1506_v58 = vpop.f32.mrf.mxu1 }
 0x555   : > { %v1507_v0 = vadd.f32 %v2179_v39, %v1506_v58  ;;  %v2182_v39 = vld [vmem:[%s3004_s5] ss:$0 sm:$0xff] }
 0x557   : > { %v1510_v28 = vadd.f32 %v2261_v24, %v1507_v0  ;;  %v2183_v0 = vld [vmem:[%s3005_s27] ss:$0 sm:$0xff] }
 0x559   : > { %v1515_v59 = vsel %vm1514_vm14, %v1510_v28, 0.0 }
 0x55a   : > { %1516 = vadd.xlane.f32.xlu2 %v1515_v59 }
 0x5c5   : > { %v1513_v43 = vpop.xlane.xlu1 %1512 }
 0x5c6   : > { %v1525_v3 = vmul.f32 %v2830_v2, %v1513_v43 }
 0x5c8   : > { %v1527_v37 = vsub.f32 %v1509_v57, %v1525_v3 }
 0x5ca   : > { %v1529_v5 = vmul.f32 %v1527_v37, %v1527_v37 }
 0x5cc   : > { %v1531_v7 = vsel %vm730_vm2, %v1529_v5, 0.0 }
 0x5cd   : > { %v1517_v46 = vpop.xlane.xlu2 %1516  ;;  %1532 = vadd.xlane.f32.xlu0 %v1531_v7 }
 0x5ce   : > { %v1526_v49 = vmul.f32 %v2830_v2, %v1517_v46 }
 0x5d0   : > { %v1528_v36 = vsub.f32 %v1510_v28, %v1526_v49 }
 0x5d2   : > { %v1530_v8 = vmul.f32 %v1528_v36, %v1528_v36 }
 0x5d4   : > { %v1534_v30 = vsel %vm1514_vm14, %v1530_v8, 0.0 }
 0x5d5   : > { %1535 = vadd.xlane.f32.xlu1 %v1534_v30 }
 0x640   : > { %v1533_v9 = vpop.xlane.xlu0 %1532 }
 0x641   : > { %v1537_v48 = vmul.f32 %v1533_v9, %v2830_v2 }
 0x643   : > { %v1539_v13 = vadd.f32 1e-05, %v1537_v48 }
 0x645   : > { %2252 = vrsqrt.f32 %v1539_v13  ;;  %vm1547_vm1 = vweird.f32 %v1539_v13 }
 0x648   : > { %v1536_v50 = vpop.xlane.xlu1 %1535 }
 0x649   : > { %v1538_v12 = vmul.f32 %v1536_v50, %v2830_v2 }
 0x64b   : > { %v2253_v19 = vpop.eup %2252  ;;  %v1540_v20 = vadd.f32 1e-05, %v1538_v12 }
 0x64c   : > { %v1542_v54 = vmul.f32 %v2253_v19, %v1539_v13  ;;  %vm1548_vm0 = vweird.f32 %v2253_v19 }
 0x64d   : > { %2254 = vrsqrt.f32 %v1540_v20  ;;  %vm1549_vm3 = vmor %vm1547_vm1, %vm1548_vm0  ;;  %vm1557_vm5 = vweird.f32 %v1540_v20 }
 0x64e   : > { %v1543_v23 = vmul.f32 %v2253_v19, %v1542_v54 }
 0x650   : > { %v1544_v29 = vmul.f32 0.5, %v1543_v23 }
 0x652   : > { %v1545_v21 = vsub.f32 1.5, %v1544_v29 }
 0x653   : > { %v2255_v25 = vpop.eup %2254 }
 0x654   : > { %v1546_v26 = vmul.f32 %v2253_v19, %v1545_v21  ;;  %v1552_v27 = vmul.f32 %v2255_v25, %v1540_v20  ;;  %vm1558_vm4 = vweird.f32 %v2255_v25 }
 0x655   : > { %vm1559_vm6 = vmor %vm1557_vm5, %vm1558_vm4 }
 0x656   : > { %v1553_v31 = vmul.f32 %v2255_v25, %v1552_v27  ;;  %v1550_v32 = vsel %vm1549_vm3, %v2253_v19, %v1546_v26 }
 0x657   : > { %v1561_v15 = vmul.f32 %v1550_v32, %v1527_v37 }
 0x658   : > { %v1554_v33 = vmul.f32 0.5, %v1553_v31  ;;  %v2185_v31 = vld [vmem:[%s695_s30] ss:$0 sm:$0xff] }
 0x659   : > { %v1567_v40 = vmul.f32 %v2180_v34, %v1561_v15 }
 0x65a   : > { %v1555_v51 = vsub.f32 1.5, %v1554_v33 }
 0x65b   : > { %v1573_v6 = vadd.f32 %v2181_v38, %v1567_v40 }
 0x65c   : > { %v1556_v35 = vmul.f32 %v2255_v25, %v1555_v51 }
 0x65e   : > { %v1560_v16 = vsel %vm1559_vm6, %v2255_v25, %v1556_v35  ;;  %v2184_v25 = vld [vmem:[%s692_s1] ss:$0 sm:$0xff]  ;;  %s3006_s1 = sld [smem:[#allocation8_spill]] }
 0x65f   : > { %v1562_v41 = vmul.f32 %v1560_v16, %v1528_v36 }
 0x661   : > { %v1568_v1 = vmul.f32 %v2180_v34, %v1562_v41 }
 0x663   : > { %v1574_v17 = vadd.f32 %v2181_v38, %v1568_v1 }
 0x664   : > { %p2036_p1 = scmp.ne.s32.totalorder %s3006_s1, 1 }
 0x665   : > { %v1575_v47 = vpack.c.bf16 %v1574_v17, %v1573_v6  ;;  %s3007_s24 = sld [smem:[#allocation23_spill]] (!%p2036_p1) }
 0x666   : > { %s3008_s0 = sld [smem:[#allocation24_spill]] (!%p2036_p1) }
 0x667   : > { %2018 = vmatmul.msk.bf16.vlgmr.msra.gmra.mxu2 %vm730_vm2, %v1575_v47 }
 0x6ea   : > { %v1608_v55 = vpop.f32.mrf.mxu2 }
 0x6eb   : > { %v1609_v56 = vadd.f32 %v2182_v39, %v1608_v55 }
 0x6ed   : > { %v1613_v57 = vmax.f32 %v1609_v56, 0.0 }
 0x6f2   : > { %v1610_v22 = vpop.f32.mrf.mxu2 }
 0x6f3   : > { %v1611_v44 = vadd.f32 %v2182_v39, %v1610_v22 }
 0x6f5   : > { %v1614_v18 = vmax.f32 %v1611_v44, 0.0 }
 0x6f7   : > { %v1615_v58 = vpack.c.bf16 %v1614_v18, %v1613_v57 }
 0x6f9   : > { %2035 = vmatmul.msk.bf16.vlgmr.msra.gmra.mxu3 %vm1652_vm7, %v1615_v58 }
 0x77c   : > { %v1665_v24 = vpop.f32.mrf.mxu3 }
 0x77d   : > { %v1666_v28 = vadd.f32 %v2183_v0, %v1665_v24 }
 0x77f   : > { %v1670_v59 = vadd.f32 %v1666_v28, %v1573_v6 }
 0x781   : > { %v1672_v10 = vsel %vm730_vm2, %v1670_v59, 0.0 }
 0x782   : > { %1673 = vadd.xlane.f32.xlu2 %v1672_v10 }
 0x784   : > { %v1667_v60 = vpop.f32.mrf.mxu3 }
 0x785   : > { %v1668_v61 = vadd.f32 %v2183_v0, %v1667_v60 }
 0x787   : > { %v1671_v62 = vadd.f32 %v1668_v61, %v1574_v17 }
 0x789   : > { %v1675_v4 = vsel %vm1514_vm14, %v1671_v62, 0.0 }
 0x78a   : > { %1676 = vadd.xlane.f32.xlu0 %v1675_v4 }
 0x7f5   : > { %v1674_v63 = vpop.xlane.xlu2 %1673 }
 0x7f6   : > { %v1678_v43 = vmul.f32 %v1674_v63, %v2830_v2 }
 0x7f8   : > { %v1680_v3 = vsub.f32 %v1670_v59, %v1678_v43 }
 0x7fa   : > { %v1682_v37 = vmul.f32 %v1680_v3, %v1680_v3 }
 0x7fc   : > { %v1684_v5 = vsel %vm730_vm2, %v1682_v37, 0.0 }
 0x7fd   : > { %v1677_v7 = vpop.xlane.xlu0 %1676  ;;  %1685 = vadd.xlane.f32.xlu1 %v1684_v5 }
 0x7fe   : > { %v1679_v46 = vmul.f32 %v1677_v7, %v2830_v2 }
 0x800   : > { %v1681_v49 = vsub.f32 %v1671_v62, %v1679_v46 }
 0x802   : > { %v1683_v36 = vmul.f32 %v1681_v49, %v1681_v49 }
 0x804   : > { %v1687_v8 = vsel %vm1514_vm14, %v1683_v36, 0.0 }
 0x805   : > { %1688 = vadd.xlane.f32.xlu2 %v1687_v8 }
 0x870   : > { %v1686_v30 = vpop.xlane.xlu1 %1685 }
 0x871   : > { %v1690_v9 = vmul.f32 %v1686_v30, %v2830_v2 }
 0x873   : > { %v1692_v11 = vadd.f32 1e-05, %v1690_v9 }
 0x875   : > { %2256 = vrsqrt.f32 %v1692_v11  ;;  %vm1700_vm9 = vweird.f32 %v1692_v11 }
 0x878   : > { %v1689_v48 = vpop.xlane.xlu2 %1688 }
 0x879   : > { %v1691_v13 = vmul.f32 %v1689_v48, %v2830_v2 }
 0x87b   : > { %v2257_v14 = vpop.eup %2256  ;;  %v1693_v50 = vadd.f32 1e-05, %v1691_v13 }
 0x87c   : > { %v1695_v12 = vmul.f32 %v2257_v14, %v1692_v11  ;;  %vm1701_vm8 = vweird.f32 %v2257_v14 }
 0x87d   : > { %2258 = vrsqrt.f32 %v1693_v50  ;;  %vm1702_vm10 = vmor %vm1700_vm9, %vm1701_vm8  ;;  %vm1710_vm12 = vweird.f32 %v1693_v50 }
 0x87e   : > { %v1696_v19 = vmul.f32 %v2257_v14, %v1695_v12 }
 0x880   : > { %v1697_v20 = vmul.f32 0.5, %v1696_v19 }
 0x882   : > { %v1698_v54 = vsub.f32 1.5, %v1697_v20 }
 0x883   : > { %v2259_v23 = vpop.eup %2258 }
 0x884   : > { %v1699_v29 = vmul.f32 %v2257_v14, %v1698_v54  ;;  %v1705_v21 = vmul.f32 %v2259_v23, %v1693_v50  ;;  %vm1711_vm11 = vweird.f32 %v2259_v23 }
 0x885   : > { %vm1712_vm13 = vmor %vm1710_vm12, %vm1711_vm11 }
 0x886   : > { %v1703_v26 = vsel %vm1702_vm10, %v2257_v14, %v1699_v29  ;;  %v1706_v27 = vmul.f32 %v2259_v23, %v1705_v21 }
 0x887   : > { %v1714_v32 = vmul.f32 %v1703_v26, %v1680_v3 }
 0x888   : > { %v1707_v33 = vmul.f32 0.5, %v1706_v27 }
 0x889   : > { %v1720_v51 = vmul.f32 %v2184_v25, %v1714_v32 }
 0x88a   : > { %v1708_v34 = vsub.f32 1.5, %v1707_v33 }
 0x88b   : > { %v1726_v15 = vadd.f32 %v2185_v31, %v1720_v51 }
 0x88c   : > { %v1709_v35 = vmul.f32 %v2259_v23, %v1708_v34 }
 0x88d   : > { %1728 = vst.msk [vmem:[#allocation2] sm:$0xff] %vm730_vm2, %v1726_v15 }
 0x88e   : > { %v1713_v16 = vsel %vm1712_vm13, %v2259_v23, %v1709_v35 }
 0x88f   : > { %v1715_v38 = vmul.f32 %v1713_v16, %v1681_v49 }
 0x891   : > { %v1721_v40 = vmul.f32 %v2184_v25, %v1715_v38  ;;  %1733 = sbr.rel (%p2036_p1) target bundleno = 2467 (0x9a3), region = 88 }
 0x893   : > { %v1727_v41 = vadd.f32 %v2185_v31, %v1721_v40 }
 0x895   : > { %1729 = vst.msk [vmem:[#allocation2 + $0x8] sm:$0x1] %vm1514_vm14, %v1727_v41 }
 0x896   : > { %v1734_v1 = vsel %vm1514_vm14, %v1726_v15, 0.0  ;;  %v1756_v58 = vld [vmem:[%s3007_s24] sm:$0x1] }
 0x897   : > { %1735 = vadd.xlane.f32.xlu0 %v1734_v1 }
 0x90a   : > { %v1736_v6 = vpop.xlane.xlu0 %1735 }
 0x90b   : > { %v1737_v17 = vmul.f32 %v1736_v6, %v2830_v2 }
 0x90d   : > { %v1738_v47 = vsub.f32 %v1726_v15, %v1737_v17 }
 0x90f   : > { %v1739_v45 = vmul.f32 %v1738_v47, %v1738_v47 }
 0x911   : > { %v1740_v52 = vsel %vm1514_vm14, %v1739_v45, 0.0 }
 0x912   : > { %1741 = vadd.xlane.f32.xlu0 %v1740_v52 }
 0x985   : > { %v1742_v53 = vpop.xlane.xlu0 %1741 }
 0x986   : > { %v1743_v42 = vmul.f32 %v1742_v53, %v2830_v2  ;;  %v1758_v2 = vld [vmem:[%s3008_s0] sm:$0x1] }
 0x988   : > { %v1744_v55 = vadd.f32 1e-05, %v1743_v42 }
 0x98a   : > { %2262 = vrsqrt.f32 %v1744_v55  ;;  %vm1751_vm15 = vweird.f32 %v1744_v55 }
 0x990   : > { %v2263_v39 = vpop.eup %2262 }
 0x991   : > { %v1746_v56 = vmul.f32 %v2263_v39, %v1744_v55  ;;  %vm1752_vm2 = vweird.f32 %v2263_v39 }
 0x992   : > { %vm1753_vm0 = vmor %vm1751_vm15, %vm1752_vm2 }
 0x993   : > { %v1747_v22 = vmul.f32 %v2263_v39, %v1746_v56 }
 0x995   : > { %v1748_v44 = vmul.f32 0.5, %v1747_v22 }
 0x997   : > { %v1749_v57 = vsub.f32 1.5, %v1748_v44 }
 0x999   : > { %v1750_v18 = vmul.f32 %v2263_v39, %v1749_v57 }
 0x99b   : > { %v1754_v0 = vsel %vm1753_vm0, %v2263_v39, %v1750_v18 }
 0x99c   : > { %v1755_v24 = vmul.f32 %v1754_v0, %v1738_v47 }
 0x99e   : > { %v1757_v28 = vmul.f32 %v1756_v58, %v1755_v24 }
 0x9a0   : > { %v1759_v59 = vadd.f32 %v1758_v2, %v1757_v28 }
 0x9a2   : > { %1760 = vst.msk [vmem:[%s2591_s3] sm:$0x1] %vm1514_vm14, %v1759_v59 }
 0x9a3 PF: > { %s3009_s28 = sld [smem:[#allocation9_spill]]  ;;  %s1772_s14 = sshll.u32 %s2591_s3, 4  ;;  %s1773_s14 = int_to_ptr.vmem [resolvable:$true] %s1772_s14 }
 0x9a4   : > { %s3010_s29 = sld [smem:[#allocation25_spill]]  ;;  %s3012_s27 = sand.u32 1, %s2334_s19  }
 0x9a5   : > { %s1762_s13 = scalar_lea.sflag [#allocation4], %s3012_s27 }
 0x9aa   : > { %s1770_s5 = scalar_lea.hbm %s3010_s29, %s3009_s28  ;;  %s2284_s18 = scalar_lea.hbm %s3010_s29, 2 }
 0x9ab   : > { %s1774_s22 = sshll.u32 %s1770_s5, 4  ;;  %s1775_s22 = int_to_ptr.hbm [resolvable:$true] %s1774_s22 }
 0x9ac   : > { %s2278_s21 = sshra.s32 %s1775_s22, 4  ;;  %s2279_s21 = int_to_ptr.hbm [resolvable:$true] %s2278_s21 }
 0x9ad   : > { %s2280_s16 = scalar_lea.hbm %s2279_s21, 1  ;;  %p2285_p6 = scmp.lt.s32.totalorder %s2279_s21, %s3010_s29 }
 0x9ae   : > { %p2281_p2 = scmp.ne.s32.totalorder %s2279_s21, %s2280_s16  ;;  %p2286_p7 = scmp.lt.s32.totalorder %s2284_s18, %s2280_s16 }
 0x9b0   : > { %p2282_p4 = pnand %p2281_p2, %p2507_p3  ;;  %p2287_p8 = por %p2286_p7, %p2285_p6 }
 0x9b2   : > { %p2283_p5 = pneg %p2282_p4 }
 0x9b4   : > { %p2288_p10 = pnand %p2287_p8, %p2283_p5 }
 0x9b6   : > { %2291 = shalt.err (!%p2288_p10)
}
 0x9b7   : > { %2054 = dma.vmem_to_hbm [thread:$0]  (%p2507_p3), %s1773_s14, 16, %s1775_s22, %s1762_s13  }
 0x9b8 PF: > { %s3013_s3 = sld [smem:[#allocation12_spill]] }
 0x9b9   : > { %s3014_s17 = sld [smem:[#allocation6_spill]] }
 0x9be   : > { %p2060_p11 = scmp.ge.s32.totalorder %s3013_s3, 2 }
 0x9bf   : > { %s1786_s0 = sand.u32 1, %s3014_s17  }
 0x9c0   : > { %p2057_p12 = pnand %p2060_p11, %p2517_p9  ;;  %s1787_s28 = scalar_lea.sflag [#allocation4], %s1786_s0 }
 0x9c2   : > { %p2058_p13 = pneg %p2057_p12 }
 0x9c4   : > { %2325 = dma.done.wait (%p2058_p13), %s1787_s28, 16  }
 0x9c5   : > { %2327 = vsyncadd (%p2058_p13), %s1787_s28, 4294967280  ;;  %s28_s25 = sadd.s32 1, %s3013_s3   ;;  %s3016_s15 = sld [smem:[#allocation7_spill]] }
 0x9c6   : > { %p25_p0 = scmp.ge.s32.totalorder %s28_s25, 6   ;;  %s3017_s20 = sld [smem:[#allocation17_spill]] }
 0x9c7   : > { %s3018_s21 = sld [smem:[#allocation10_spill]]  ;;  %s3022_s18 = smov %s2334_s19 }
 0x9c8   : > { %s3019_s22 = sld [smem:[#allocation11_spill]]  ;;  %27 = sbr.rel (!%p25_p0) target bundleno = 13 (0xd), region = 159 }
 0x9c9   : > { %s3020_s23 = sld [smem:[#allocation13_spill]] }
 0x9ca   : > { %s3021_s24 = sld [smem:[#allocation15_spill]] }
 0x9cb   : > { %s3023_s19 = smov %s3016_s15 }
 0x9cd   :  { %1792 = vsyncpa [#allocation4], 1 }
 0x9ce   :  { %1794 = vsyncpa [#allocation4 + $0x1], 1 }

</bundles_post_ra>
